<compile_context>
chip_gen: v6e
topology: v6e:2x2x1
jax: 0.10.0
libtpu: 0.0.40
codegen_flags: <defaults>
</compile_context>

<pallas_src>
import functools

import numpy as np
import jax
import jax.numpy as jnp
from jax.experimental import pallas as pl
from jax.experimental.pallas import tpu as pltpu


TB = 8  # batch tile: multiple of 8 -> sublane-aligned per-tap slices


# ----------------------------------------------------------------------------
# Fused kernel: ReLU -> AvgPool(5,s2) -> 1x1Conv(+BN) -> ReLU -> 2x2Conv ->
#               ReLU -> Linear, all VMEM-resident, one batch tile per grid step.
# ----------------------------------------------------------------------------
def _aux_head_kernel(x_ref, pblk_ref, w1_ref, b1_ref, w2_ref, wc_ref, bc_ref,
                     o_ref, *, tb, n_pos, c_mid):
    # ReLU on the channel-last (tb*H*W, C) slab (f32).
    x = jnp.maximum(x_ref[...], 0.0)

    # AvgPool2d(5, stride=2, padding=0): one matmul with the fixed-size
    # block-diagonal pooling matrix; rows ordered (pool_pos, sample_in_tile).
    # padding=0 => every window is fully valid, so count_include_pad is moot.
    pooled = jnp.dot(pblk_ref[...], x,
                     preferred_element_type=jnp.float32)          # (n_pos*tb, C)

    # Conv2d(C, 128, 1, bias=False) + folded BatchNorm2d(128) + ReLU.
    # Weights arrive as bf16 (half DMA bytes) and are widened to f32 right
    # before the dot (avoids the unsupported BF16xBF16=F32 dot path).
    h1 = jnp.dot(pooled, w1_ref[...].astype(jnp.float32),
                 preferred_element_type=jnp.float32)
    h1 = jnp.maximum(h1 + b1_ref[...], 0.0)                       # (n_pos*tb, c_mid)

    # Conv2d(128, 768, 2, bias=False): the 2x2 kernel consumes the whole 2x2
    # pooled map -> sum over the n_pos taps of (tb, c_mid) @ (c_mid, 768)
    # matmuls (static unrolled loop; tb=8 keeps every slice sublane-aligned).
    w2 = w2_ref[...].astype(jnp.float32)
    h2 = jnp.dot(h1[0:tb, :], w2[0:c_mid, :],
                 preferred_element_type=jnp.float32)
    for p in range(1, n_pos):
        h2 = h2 + jnp.dot(h1[p * tb:(p + 1) * tb, :],
                          w2[p * c_mid:(p + 1) * c_mid, :],
                          preferred_element_type=jnp.float32)
    h2 = jnp.maximum(h2, 0.0)                                     # (tb, 768)

    # Linear(768, num_classes) -> lane-dense padded output tile.
    o_ref[...] = jnp.dot(h2, wc_ref[...].astype(jnp.float32),
                         preferred_element_type=jnp.float32) + bc_ref[...]


# ----------------------------------------------------------------------------
# Host-side helpers (static data / layout plumbing done once, outside the hot path)
# ----------------------------------------------------------------------------
@functools.lru_cache(maxsize=None)
def _build_pool_block(tb, h, w, oh, ow, k=5, s=2):
    """Fixed-size block-diagonal pooling matrix for one batch tile.

    P[(p*tb + b), (b*H*W + hw)] = 1/25 for hw inside window p. Shape
    (oh*ow*tb, tb*H*W) — independent of the total batch size."""
    hw = h * w
    m = np.zeros((oh * ow * tb, tb * hw), np.float32)
    inv = 1.0 / float(k * k)
    for ph in range(oh):
        for pw in range(ow):
            p = ph * ow + pw
            for b in range(tb):
                row = p * tb + b
                for dh in range(k):
                    for dw in range(k):
                        m[row, b * hw + (ph * s + dh) * w + (pw * s + dw)] = inv
    return m


def build_params(key, c_in, c_mid=128, c_feat=768, num_classes=10):
    ks = jax.random.split(key, 8)
    w1 = jax.random.normal(ks[0], (c_mid, c_in), jnp.float32) * 0.1
    gamma = jax.random.uniform(ks[1], (c_mid,), jnp.float32, 0.5, 1.5)
    beta = jax.random.normal(ks[2], (c_mid,), jnp.float32) * 0.1
    rmean = jax.random.normal(ks[3], (c_mid,), jnp.float32) * 0.1
    rvar = jax.random.uniform(ks[4], (c_mid,), jnp.float32, 0.5, 1.5)
    w2 = jax.random.normal(ks[5], (c_feat, c_mid, 2, 2), jnp.float32) * 0.05
    wc = jax.random.normal(ks[6], (num_classes, c_feat), jnp.float32) * 0.05
    bc = jax.random.normal(ks[7], (num_classes,), jnp.float32) * 0.1

    # Fold BN (inference running stats) into the 1x1 conv: y = scale*conv(x)+shift.
    scale = gamma / jnp.sqrt(rvar + 1e-5)
    shift = beta - rmean * scale

    # Lane-dense classifier: pad num_classes up to a multiple of 128.
    nc_pad = ((num_classes + 127) // 128) * 128
    wct_pad = jnp.zeros((c_feat, nc_pad), jnp.float32).at[:, :num_classes].set(wc.T)
    bc_pad = jnp.zeros((1, nc_pad), jnp.float32).at[0, :num_classes].set(bc)

    return {
        # (C, c_mid) bf16, BN scale folded in
        "w1t": (w1 * scale[:, None]).T.astype(jnp.bfloat16),
        "b1": shift.reshape(1, c_mid).astype(jnp.float32),
        # (4*c_mid, c_feat) bf16, rows ordered (pool_pos=(kh,kw), ci)
        "w2t": jnp.transpose(w2, (2, 3, 1, 0)).reshape(4 * c_mid, c_feat).astype(jnp.bfloat16),
        # (c_feat, nc_pad) bf16 / (1, nc_pad) f32, lane-dense padded
        "wct": wct_pad.astype(jnp.bfloat16),
        "bc": bc_pad,
    }


@functools.partial(jax.jit, static_argnames=("num_classes",))
def auxiliary_head_imagenet(x, params, *, num_classes):
    n, c, h, w = x.shape
    oh = (h - 5) // 2 + 1
    ow = (w - 5) // 2 + 1
    # Linear(768, .) requires 1x1 feature spatial => pooled map must be 2x2.
    assert (oh, ow) == (2, 2), "AuxiliaryHeadImageNet needs pooled 2x2 (e.g. 7x7 input)"
    n_pos = oh * ow
    hw = h * w
    c_mid = params["w1t"].shape[1]
    c_feat = params["w2t"].shape[1]
    nc_pad = params["wct"].shape[1]

    tb = TB
    n_pad = ((n + tb - 1) // tb) * tb
    if n_pad != n:
        x = jnp.concatenate([x, jnp.zeros((n_pad - n, c, h, w), x.dtype)], axis=0)

    # One-time layout change: NCHW -> channel-last (N_pad*H*W, C) slab.
    x_cl = jnp.transpose(x, (0, 2, 3, 1)).reshape(n_pad * hw, c)
    pblk = jnp.asarray(_build_pool_block(tb, h, w, oh, ow))

    grid = (n_pad // tb,)
    kern = functools.partial(_aux_head_kernel, tb=tb, n_pos=n_pos, c_mid=c_mid)

    flops_per_step = 2 * (n_pos * tb * tb * hw * c        # pooling matmul
                          + n_pos * tb * c * c_mid        # 1x1 conv
                          + n_pos * tb * c_mid * c_feat   # 2x2 conv
                          + tb * c_feat * nc_pad)         # classifier
    bytes_accessed = (x_cl.size * 4 + pblk.size * 4
                      + params["w1t"].size * 2 + params["b1"].size * 4
                      + params["w2t"].size * 2 + params["wct"].size * 2
                      + params["bc"].size * 4 + n_pad * nc_pad * 4)

    out = pl.pallas_call(
        kern,
        out_shape=jax.ShapeDtypeStruct((n_pad, nc_pad), jnp.float32),
        grid=grid,
        in_specs=[
            pl.BlockSpec((tb * hw, c), lambda i: (i, 0)),            # x tile per step
            pl.BlockSpec(pblk.shape, lambda i: (0, 0)),              # pooling matrix (resident)
            pl.BlockSpec(params["w1t"].shape, lambda i: (0, 0)),     # weights: grid-invariant
            pl.BlockSpec(params["b1"].shape, lambda i: (0, 0)),
            pl.BlockSpec(params["w2t"].shape, lambda i: (0, 0)),
            pl.BlockSpec(params["wct"].shape, lambda i: (0, 0)),
            pl.BlockSpec(params["bc"].shape, lambda i: (0, 0)),
        ],
        out_specs=pl.BlockSpec((tb, nc_pad), lambda i: (i, 0)),
        compiler_params=pltpu.CompilerParams(
            dimension_semantics=("parallel",),
            vmem_limit_bytes=32 * 1024 * 1024),
        cost_estimate=pl.CostEstimate(
            flops=int(flops_per_step * grid[0]),
            transcendentals=0,
            bytes_accessed=int(bytes_accessed)),
    )(x_cl, pblk, params["w1t"], params["b1"], params["w2t"],
      params["wct"], params["bc"])

    return out[:n, :num_classes]


# ----------------------------------------------------------------------------
# Pure-JAX reference (mirrors the PyTorch module; same bf16-quantized folded
# weights, all math in f32).
# ----------------------------------------------------------------------------
def reference_forward(x, params, num_classes):
    n, c, h, w = x.shape
    c_mid = params["w1t"].shape[1]
    oh = (h - 5) // 2 + 1
    ow = (w - 5) // 2 + 1
    w1 = params["w1t"].astype(jnp.float32)
    w2 = params["w2t"].astype(jnp.float32)
    wc = params["wct"].astype(jnp.float32)

    y = jnp.maximum(x, 0.0)
    pooled = jnp.stack(
        [jnp.stack([jnp.mean(y[:, :, 2 * ph:2 * ph + 5, 2 * pw:2 * pw + 5],
                             axis=(2, 3)) for pw in range(ow)], axis=-1)
         for ph in range(oh)], axis=-2)                               # (N, C, 2, 2)
    h1 = jnp.einsum("nchw,cm->nmhw", pooled, w1)
    h1 = jnp.maximum(h1 + params["b1"].reshape(1, c_mid, 1, 1), 0.0)
    h1f = jnp.transpose(h1, (0, 2, 3, 1)).reshape(n, oh * ow * c_mid)
    h2 = jnp.maximum(jnp.dot(h1f, w2), 0.0)
    out = jnp.dot(h2, wc) + params["bc"]
    return out[:, :num_classes]


# ----------------------------------------------------------------------------
if __name__ == "__main__":
    key = jax.random.PRNGKey(0)
    k_x, k_p = jax.random.split(key)

    N, C, H, W = 2, 64, 7, 7          # aux head input (DARTS feeds 7x7 here)
    NUM_CLASSES = 10

    params = build_params(k_p, C, num_classes=NUM_CLASSES)
    x = jax.random.normal(k_x, (N, C, H, W), jnp.float32)

    logits = jax.block_until_ready(
        auxiliary_head_imagenet(x, params, num_classes=NUM_CLASSES))

    assert logits.shape == (N, NUM_CLASSES), logits.shape
    assert bool(jnp.all(jnp.isfinite(logits)))

    ref = reference_forward(x, params, NUM_CLASSES)
    max_err = float(jnp.max(jnp.abs(logits - ref)))
    assert bool(jnp.allclose(logits, ref, rtol=1e-3, atol=1e-3)), max_err

    print("KERNEL_OK")
</pallas_src>

<mosaic_0001>
module attributes {stable_mosaic.version = 11 : i64} {
  func.func @_aux_head_kernel(%arg0: i32, %arg1: memref<392x64xf32, #tpu.memory_space<vmem>>, %arg2: memref<32x392xf32, #tpu.memory_space<vmem>>, %arg3: memref<64x128xbf16, #tpu.memory_space<vmem>>, %arg4: memref<1x128xf32, #tpu.memory_space<vmem>>, %arg5: memref<512x768xbf16, #tpu.memory_space<vmem>>, %arg6: memref<768x128xbf16, #tpu.memory_space<vmem>>, %arg7: memref<1x128xf32, #tpu.memory_space<vmem>>, %arg8: memref<8x128xf32, #tpu.memory_space<vmem>>) attributes {dimension_semantics = [#tpu.dimension_semantics<parallel>], iteration_bounds = array<i64: 1>, scalar_prefetch = 0 : i64, scratch_operands = 0 : i64, tpu.core_type = #tpu.core_type<tc>, window_params = [{transform_indices = @transform_0, window_bounds = array<i64: 392, 64>}, {pipeline_mode = #tpu.pipeline_mode<synchronous>, transform_indices = @transform_1, window_bounds = array<i64: 32, 392>}, {pipeline_mode = #tpu.pipeline_mode<synchronous>, transform_indices = @transform_2, window_bounds = array<i64: 64, 128>}, {pipeline_mode = #tpu.pipeline_mode<synchronous>, transform_indices = @transform_3, window_bounds = array<i64: 1, 128>}, {pipeline_mode = #tpu.pipeline_mode<synchronous>, transform_indices = @transform_4, window_bounds = array<i64: 512, 768>}, {pipeline_mode = #tpu.pipeline_mode<synchronous>, transform_indices = @transform_5, window_bounds = array<i64: 768, 128>}, {pipeline_mode = #tpu.pipeline_mode<synchronous>, transform_indices = @transform_6, window_bounds = array<i64: 1, 128>}, {transform_indices = @transform_7, window_bounds = array<i64: 8, 128>}]} {
    %c0 = arith.constant 0 : index
    %c0_0 = arith.constant 0 : index
    %0 = vector.load %arg1[%c0, %c0_0] : memref<392x64xf32, #tpu.memory_space<vmem>>, vector<392x64xf32>
    %cst = arith.constant 0.000000e+00 : f32
    %1 = vector.broadcast %cst : f32 to vector<392x64xf32>
    %2 = arith.maximumf %0, %1 : vector<392x64xf32>
    %c0_1 = arith.constant 0 : index
    %c0_2 = arith.constant 0 : index
    %3 = vector.load %arg2[%c0_1, %c0_2] : memref<32x392xf32, #tpu.memory_space<vmem>>, vector<32x392xf32>
    %cst_3 = arith.constant dense<0.000000e+00> : vector<32x64xf32>
    %4 = tpu.matmul %3, %2, %cst_3 {dimension_numbers = #tpu.dot_dimension_numbers<[1], [0], [0], [1], [0, 0, 1, 1], [], []>} : vector<32x392xf32>, vector<392x64xf32>, vector<32x64xf32> -> vector<32x64xf32>
    %c0_4 = arith.constant 0 : index
    %c0_5 = arith.constant 0 : index
    %5 = vector.load %arg3[%c0_4, %c0_5] : memref<64x128xbf16, #tpu.memory_space<vmem>>, vector<64x128xbf16>
    %6 = arith.extf %5 : vector<64x128xbf16> to vector<64x128xf32>
    %cst_6 = arith.constant dense<0.000000e+00> : vector<32x128xf32>
    %7 = tpu.matmul %4, %6, %cst_6 {dimension_numbers = #tpu.dot_dimension_numbers<[1], [0], [0], [1], [0, 0, 1, 1], [], []>} : vector<32x64xf32>, vector<64x128xf32>, vector<32x128xf32> -> vector<32x128xf32>
    %c0_7 = arith.constant 0 : index
    %c0_8 = arith.constant 0 : index
    %8 = vector.load %arg4[%c0_7, %c0_8] : memref<1x128xf32, #tpu.memory_space<vmem>>, vector<1x128xf32>
    %9 = vector.broadcast %8 : vector<1x128xf32> to vector<32x128xf32>
    %10 = arith.addf %7, %9 : vector<32x128xf32>
    %cst_9 = arith.constant 0.000000e+00 : f32
    %11 = vector.broadcast %cst_9 : f32 to vector<32x128xf32>
    %12 = arith.maximumf %10, %11 : vector<32x128xf32>
    %c0_10 = arith.constant 0 : index
    %c0_11 = arith.constant 0 : index
    %13 = vector.load %arg5[%c0_10, %c0_11] : memref<512x768xbf16, #tpu.memory_space<vmem>>, vector<512x768xbf16>
    %14 = arith.extf %13 : vector<512x768xbf16> to vector<512x768xf32>
    %15 = vector.extract_strided_slice %12 {offsets = [0, 0], sizes = [8, 128], strides = [1, 1]} : vector<32x128xf32> to vector<8x128xf32>
    %16 = vector.extract_strided_slice %14 {offsets = [0, 0], sizes = [128, 768], strides = [1, 1]} : vector<512x768xf32> to vector<128x768xf32>
    %cst_12 = arith.constant dense<0.000000e+00> : vector<8x768xf32>
    %17 = tpu.matmul %15, %16, %cst_12 {dimension_numbers = #tpu.dot_dimension_numbers<[1], [0], [0], [1], [0, 0, 1, 1], [], []>} : vector<8x128xf32>, vector<128x768xf32>, vector<8x768xf32> -> vector<8x768xf32>
    %18 = vector.extract_strided_slice %12 {offsets = [8, 0], sizes = [8, 128], strides = [1, 1]} : vector<32x128xf32> to vector<8x128xf32>
    %19 = vector.extract_strided_slice %14 {offsets = [128, 0], sizes = [128, 768], strides = [1, 1]} : vector<512x768xf32> to vector<128x768xf32>
    %cst_13 = arith.constant dense<0.000000e+00> : vector<8x768xf32>
    %20 = tpu.matmul %18, %19, %cst_13 {dimension_numbers = #tpu.dot_dimension_numbers<[1], [0], [0], [1], [0, 0, 1, 1], [], []>} : vector<8x128xf32>, vector<128x768xf32>, vector<8x768xf32> -> vector<8x768xf32>
    %21 = arith.addf %17, %20 : vector<8x768xf32>
    %22 = vector.extract_strided_slice %12 {offsets = [16, 0], sizes = [8, 128], strides = [1, 1]} : vector<32x128xf32> to vector<8x128xf32>
    %23 = vector.extract_strided_slice %14 {offsets = [256, 0], sizes = [128, 768], strides = [1, 1]} : vector<512x768xf32> to vector<128x768xf32>
    %cst_14 = arith.constant dense<0.000000e+00> : vector<8x768xf32>
    %24 = tpu.matmul %22, %23, %cst_14 {dimension_numbers = #tpu.dot_dimension_numbers<[1], [0], [0], [1], [0, 0, 1, 1], [], []>} : vector<8x128xf32>, vector<128x768xf32>, vector<8x768xf32> -> vector<8x768xf32>
    %25 = arith.addf %21, %24 : vector<8x768xf32>
    %26 = vector.extract_strided_slice %12 {offsets = [24, 0], sizes = [8, 128], strides = [1, 1]} : vector<32x128xf32> to vector<8x128xf32>
    %27 = vector.extract_strided_slice %14 {offsets = [384, 0], sizes = [128, 768], strides = [1, 1]} : vector<512x768xf32> to vector<128x768xf32>
    %cst_15 = arith.constant dense<0.000000e+00> : vector<8x768xf32>
    %28 = tpu.matmul %26, %27, %cst_15 {dimension_numbers = #tpu.dot_dimension_numbers<[1], [0], [0], [1], [0, 0, 1, 1], [], []>} : vector<8x128xf32>, vector<128x768xf32>, vector<8x768xf32> -> vector<8x768xf32>
    %29 = arith.addf %25, %28 : vector<8x768xf32>
    %cst_16 = arith.constant 0.000000e+00 : f32
    %30 = vector.broadcast %cst_16 : f32 to vector<8x768xf32>
    %31 = arith.maximumf %29, %30 : vector<8x768xf32>
    %c0_17 = arith.constant 0 : index
    %c0_18 = arith.constant 0 : index
    %32 = vector.load %arg6[%c0_17, %c0_18] : memref<768x128xbf16, #tpu.memory_space<vmem>>, vector<768x128xbf16>
    %33 = arith.extf %32 : vector<768x128xbf16> to vector<768x128xf32>
    %cst_19 = arith.constant dense<0.000000e+00> : vector<8x128xf32>
    %34 = tpu.matmul %31, %33, %cst_19 {dimension_numbers = #tpu.dot_dimension_numbers<[1], [0], [0], [1], [0, 0, 1, 1], [], []>} : vector<8x768xf32>, vector<768x128xf32>, vector<8x128xf32> -> vector<8x128xf32>
    %c0_20 = arith.constant 0 : index
    %c0_21 = arith.constant 0 : index
    %35 = vector.load %arg7[%c0_20, %c0_21] : memref<1x128xf32, #tpu.memory_space<vmem>>, vector<1x128xf32>
    %36 = vector.broadcast %35 : vector<1x128xf32> to vector<8x128xf32>
    %37 = arith.addf %34, %36 : vector<8x128xf32>
    %c0_22 = arith.constant 0 : index
    %c0_23 = arith.constant 0 : index
    %38 = vector.load %arg8[%c0_22, %c0_23] : memref<8x128xf32, #tpu.memory_space<vmem>>, vector<8x128xf32>
    tpu.vector_store %arg8[%c0_22, %c0_23], %37 {strides = array<i32>} : memref<8x128xf32, #tpu.memory_space<vmem>>, vector<8x128xf32>,
    return
  }
  func.func @transform_0(%arg0: i32) -> (i32, i32) {
    %c0_i32 = arith.constant 0 : i32
    %c0_i32_0 = arith.constant 0 : i32
    return %arg0, %c0_i32 : i32, i32
  }
  func.func @transform_1(%arg0: i32) -> (i32, i32) {
    %c0_i32 = arith.constant 0 : i32
    %c0_i32_0 = arith.constant 0 : i32
    %c0_i32_1 = arith.constant 0 : i32
    return %c0_i32, %c0_i32_0 : i32, i32
  }
  func.func @transform_2(%arg0: i32) -> (i32, i32) {
    %c0_i32 = arith.constant 0 : i32
    %c0_i32_0 = arith.constant 0 : i32
    %c0_i32_1 = arith.constant 0 : i32
    return %c0_i32, %c0_i32_0 : i32, i32
  }
  func.func @transform_3(%arg0: i32) -> (i32, i32) {
    %c0_i32 = arith.constant 0 : i32
    %c0_i32_0 = arith.constant 0 : i32
    %c0_i32_1 = arith.constant 0 : i32
    return %c0_i32, %c0_i32_0 : i32, i32
  }
  func.func @transform_4(%arg0: i32) -> (i32, i32) {
    %c0_i32 = arith.constant 0 : i32
    %c0_i32_0 = arith.constant 0 : i32
    %c0_i32_1 = arith.constant 0 : i32
    return %c0_i32, %c0_i32_0 : i32, i32
  }
  func.func @transform_5(%arg0: i32) -> (i32, i32) {
    %c0_i32 = arith.constant 0 : i32
    %c0_i32_0 = arith.constant 0 : i32
    %c0_i32_1 = arith.constant 0 : i32
    return %c0_i32, %c0_i32_0 : i32, i32
  }
  func.func @transform_6(%arg0: i32) -> (i32, i32) {
    %c0_i32 = arith.constant 0 : i32
    %c0_i32_0 = arith.constant 0 : i32
    %c0_i32_1 = arith.constant 0 : i32
    return %c0_i32, %c0_i32_0 : i32, i32
  }
  func.func @transform_7(%arg0: i32) -> (i32, i32) {
    %c0_i32 = arith.constant 0 : i32
    %c0_i32_0 = arith.constant 0 : i32
    return %arg0, %c0_i32 : i32, i32
  }
}

</mosaic_0001>

<bundles_post_ra>
// kernel: auxiliary_head_imagenet.1
= control target key start
LH: loop header
LB: loop body
LE: loop exit
PB: predicated region body
PF: predicated region fallthrough
CT: control target
= control target key end

     0   :  { %v2761_v1 = vmov 0.0   ;;  %vm140_vm0 = vcmask 64512   ;;  %vm346_vm1 = vcmask 523264   ;;  %s3844_s0 = inlined_call_operand.vmem [shape: f32[392,64], index: 0, kind: input, shape index: {}]   ;;  %s3845_s1 = inlined_call_operand.vmem [shape: f32[32,392], index: 1, kind: input, shape index: {}]   ;;  %s3846_s2 = inlined_call_operand.vmem [shape: bf16[64,128], index: 2, kind: input, shape index: {}]   ;;  %s3847_s4 = inlined_call_operand.vmem [shape: bf16[512,768], index: 4, kind: input, shape index: {}]   ;;  %s3848_s3 = inlined_call_operand.vmem [shape: f32[1,128], index: 3, kind: input, shape index: {}]   ;;  %s3849_s5 = inlined_call_operand.vmem [shape: bf16[768,128], index: 5, kind: input, shape index: {}]   ;;  %s3850_s6 = inlined_call_operand.vmem [shape: f32[1,128], index: 6, kind: input, shape index: {}]   ;;  %s3851_s7 = inlined_call_operand.vmem [shape: f32[8,128], index: 7, kind: output, shape index: {}]  }
   0x1   :  { %v57_v0 = vld [vmem:[%s3844_s0 + $0xf8] sm:$0xff]  ;;  %238 = vmatprep.subr.mxu1 %v2761_v1  ;;  %v56_v7 = vld [vmem:[%s3844_s0 + $0xf0] sm:$0xff]  ;;  %v55_v13 = vld [vmem:[%s3844_s0 + $0xe8] sm:$0xff] }
   0x2   :  { %v41_v2 = vld [vmem:[%s3844_s0 + $0x78] sm:$0xff]  ;;  %v106_v4 = vmax.f32 %v57_v0, 0.0  ;;  %v40_v8 = vld [vmem:[%s3844_s0 + $0x70] sm:$0xff]  ;;  %v105_v10 = vmax.f32 %v56_v7, 0.0  ;;  %v39_v14 = vld [vmem:[%s3844_s0 + $0x68] sm:$0xff]  ;;  %v104_v16 = vmax.f32 %v55_v13, 0.0 }
   0x3   :  { %v73_v3 = vld [vmem:[%s3844_s0 + $0x178] sm:$0xff]  ;;  %v90_v5 = vmax.f32 %v41_v2, 0.0  ;;  %v72_v9 = vld [vmem:[%s3844_s0 + $0x170] sm:$0xff]  ;;  %v89_v11 = vmax.f32 %v40_v8, 0.0  ;;  %v71_v15 = vld [vmem:[%s3844_s0 + $0x168] sm:$0xff]  ;;  %v88_v21 = vmax.f32 %v39_v14, 0.0 }
   0x4   :  { %v122_v6 = vmax.f32 %v73_v3, 0.0  ;;  %v121_v12 = vmax.f32 %v72_v9, 0.0  ;;  %2576 = vmatprep.subr.mxu0 %v106_v4  ;;  %v120_v17 = vmax.f32 %v71_v15, 0.0  ;;  %v54_v18 = vld [vmem:[%s3844_s0 + $0xe0] sm:$0xff]  ;;  %v53_v22 = vld [vmem:[%s3844_s0 + $0xd8] sm:$0xff]  ;;  %v52_v28 = vld [vmem:[%s3844_s0 + $0xd0] sm:$0xff] }
   0x5   :  { %v38_v19 = vld [vmem:[%s3844_s0 + $0x60] sm:$0xff]  ;;  %2577 = vmatpush3.msra.mxu0 %v90_v5  ;;  %v69_v23 = vld [vmem:[%s3844_s0 + $0x158] sm:$0xff]  ;;  %v103_v24 = vmax.f32 %v54_v18, 0.0  ;;  %v68_v29 = vld [vmem:[%s3844_s0 + $0x150] sm:$0xff]  ;;  %v102_v30 = vmax.f32 %v53_v22, 0.0  ;;  %v101_v36 = vmax.f32 %v52_v28, 0.0 }
   0x6   :  { %239 = vmatpush1.msra.mxu1 %v122_v6  ;;  %v70_v20 = vld [vmem:[%s3844_s0 + $0x160] sm:$0xff]  ;;  %2578 = vmatprep.subr.mxu0 %v105_v10  ;;  %v37_v26 = vld [vmem:[%s3844_s0 + $0x58] sm:$0xff]  ;;  %v87_v27 = vmax.f32 %v38_v19, 0.0  ;;  %v118_v31 = vmax.f32 %v69_v23, 0.0  ;;  %v36_v32 = vld [vmem:[%s3844_s0 + $0x50] sm:$0xff]  ;;  %v117_v37 = vmax.f32 %v68_v29, 0.0 }
   0x7   :  { %240 = vmatprep.subr.mxu1 %v2761_v1  ;;  %v119_v25 = vmax.f32 %v70_v20, 0.0  ;;  %2579 = vmatpush3.msra.mxu0 %v89_v11  ;;  %v86_v33 = vmax.f32 %v37_v26, 0.0  ;;  %v51_v34 = vld [vmem:[%s3844_s0 + $0xc8] sm:$0xff]  ;;  %v85_v39 = vmax.f32 %v36_v32, 0.0  ;;  %v50_v40 = vld [vmem:[%s3844_s0 + $0xc0] sm:$0xff]  ;;  %v49_v46 = vld [vmem:[%s3844_s0 + $0xb8] sm:$0xff] }
   0x8   :  { %241 = vmatpush1.msra.mxu1 %v121_v12  ;;  %2580 = vmatprep.subr.mxu0 %v104_v16  ;;  %v67_v35 = vld [vmem:[%s3844_s0 + $0x148] sm:$0xff]  ;;  %v66_v41 = vld [vmem:[%s3844_s0 + $0x140] sm:$0xff]  ;;  %v100_v42 = vmax.f32 %v51_v34, 0.0  ;;  %v65_v47 = vld [vmem:[%s3844_s0 + $0x138] sm:$0xff]  ;;  %v99_v48 = vmax.f32 %v50_v40, 0.0  ;;  %v98_v54 = vmax.f32 %v49_v46, 0.0 }
   0x9   :  { %242 = vmatprep.subr.mxu1 %v2761_v1  ;;  %2581 = vmatpush3.msra.mxu0 %v88_v21  ;;  %v35_v38 = vld [vmem:[%s3844_s0 + $0x48] sm:$0xff]  ;;  %v116_v43 = vmax.f32 %v67_v35, 0.0  ;;  %v34_v44 = vld [vmem:[%s3844_s0 + $0x40] sm:$0xff]  ;;  %v115_v49 = vmax.f32 %v66_v41, 0.0  ;;  %v33_v50 = vld [vmem:[%s3844_s0 + $0x38] sm:$0xff]  ;;  %v114_v55 = vmax.f32 %v65_v47, 0.0 }
   0xa   :  { %243 = vmatpush1.msra.mxu1 %v120_v17  ;;  %2582 = vmatprep.subr.mxu0 %v103_v24  ;;  %v84_v45 = vmax.f32 %v35_v38, 0.0  ;;  %v83_v51 = vmax.f32 %v34_v44, 0.0  ;;  %v48_v52 = vld [vmem:[%s3844_s0 + $0xb0] sm:$0xff]  ;;  %v82_v57 = vmax.f32 %v33_v50, 0.0  ;;  %v47_v58 = vld [vmem:[%s3844_s0 + $0xa8] sm:$0xff]  ;;  %v46_v0 = vld [vmem:[%s3844_s0 + $0xa0] sm:$0xff] }
   0xb   :  { %244 = vmatprep.subr.mxu1 %v2761_v1  ;;  %2583 = vmatpush3.msra.mxu0 %v87_v27  ;;  %v64_v53 = vld [vmem:[%s3844_s0 + $0x130] sm:$0xff]  ;;  %v63_v59 = vld [vmem:[%s3844_s0 + $0x128] sm:$0xff]  ;;  %v97_v60 = vmax.f32 %v48_v52, 0.0  ;;  %v62_v2 = vld [vmem:[%s3844_s0 + $0x120] sm:$0xff]  ;;  %v96_v3 = vmax.f32 %v47_v58, 0.0  ;;  %v95_v9 = vmax.f32 %v46_v0, 0.0 }
   0xc   :  { %245 = vmatpush1.msra.mxu1 %v119_v25  ;;  %2584 = vmatprep.subr.mxu0 %v102_v30  ;;  %v32_v56 = vld [vmem:[%s3844_s0 + $0x30] sm:$0xff]  ;;  %v113_v61 = vmax.f32 %v64_v53, 0.0  ;;  %v31_v62 = vld [vmem:[%s3844_s0 + $0x28] sm:$0xff]  ;;  %v112_v4 = vmax.f32 %v63_v59, 0.0  ;;  %v30_v5 = vld [vmem:[%s3844_s0 + $0x20] sm:$0xff]  ;;  %v111_v10 = vmax.f32 %v62_v2, 0.0 }
   0xd   :  { %246 = vmatprep.subr.mxu1 %v2761_v1  ;;  %2585 = vmatpush3.msra.mxu0 %v86_v33  ;;  %v81_v63 = vmax.f32 %v32_v56, 0.0  ;;  %v80_v6 = vmax.f32 %v31_v62, 0.0  ;;  %v45_v7 = vld [vmem:[%s3844_s0 + $0x98] sm:$0xff]  ;;  %v79_v12 = vmax.f32 %v30_v5, 0.0  ;;  %v44_v13 = vld [vmem:[%s3844_s0 + $0x90] sm:$0xff]  ;;  %v43_v19 = vld [vmem:[%s3844_s0 + $0x88] sm:$0xff] }
   0xe   :  { %247 = vmatpush1.msra.mxu1 %v118_v31  ;;  %2586 = vmatprep.subr.mxu0 %v101_v36  ;;  %v61_v8 = vld [vmem:[%s3844_s0 + $0x118] sm:$0xff]  ;;  %v60_v14 = vld [vmem:[%s3844_s0 + $0x110] sm:$0xff]  ;;  %v94_v15 = vmax.f32 %v45_v7, 0.0  ;;  %v59_v20 = vld [vmem:[%s3844_s0 + $0x108] sm:$0xff]  ;;  %v93_v21 = vmax.f32 %v44_v13, 0.0  ;;  %v92_v26 = vmax.f32 %v43_v19, 0.0 }
   0xf   :  { %248 = vmatprep.subr.mxu1 %v2761_v1  ;;  %2587 = vmatpush3.msra.mxu0 %v85_v39  ;;  %v29_v11 = vld [vmem:[%s3844_s0 + $0x18] sm:$0xff]  ;;  %v110_v16 = vmax.f32 %v61_v8, 0.0  ;;  %v28_v17 = vld [vmem:[%s3844_s0 + $0x10] sm:$0xff]  ;;  %v109_v22 = vmax.f32 %v60_v14, 0.0  ;;  %v27_v23 = vld [vmem:[%s3844_s0 + $0x8] sm:$0xff]  ;;  %v108_v27 = vmax.f32 %v59_v20, 0.0 }
  0x10   :  { %249 = vmatpush1.msra.mxu1 %v117_v37  ;;  %2588 = vmatprep.subr.mxu0 %v100_v42  ;;  %v78_v18 = vmax.f32 %v29_v11, 0.0  ;;  %v77_v24 = vmax.f32 %v28_v17, 0.0  ;;  %v42_v25 = vld [vmem:[%s3844_s0 + $0x80] sm:$0xff]  ;;  %v76_v30 = vmax.f32 %v27_v23, 0.0  ;;  %v125_v34 = vld [vmem:[%s3845_s1 + $0x8] sm:$0xff]  ;;  %v2528_v36 = vld [vmem:[%s3846_s2 + $0x18] sm:$0xff]  }
  0x11   :  { %250 = vmatprep.subr.mxu1 %v2761_v1  ;;  %2589 = vmatpush3.msra.mxu0 %v84_v45  ;;  %v26_v28 = vld [vmem:[%s3844_s0] sm:$0xff]  ;;  %v91_v31 = vmax.f32 %v42_v25, 0.0  ;;  %v127_v39 = vld [vmem:[%s3845_s1 + $0x18] sm:$0xff]  ;;  %v126_v40 = vld [vmem:[%s3845_s1 + $0x10] sm:$0xff]  ;;  %v2333_v42 = vunpack.c.h.bf16 %v2528_v36  ;;  %v2332_v47 = vunpack.c.l.bf16 %v2528_v36 }
  0x12   :  { %251 = vmatpush1.msra.mxu1 %v116_v43  ;;  %2590 = vmatprep.subr.mxu0 %v99_v48  ;;  %v58_v29 = vld [vmem:[%s3844_s0 + $0x100] sm:$0xff]  ;;  %v75_v33 = vmax.f32 %v26_v28, 0.0  ;;  %v129_v41 = vld [vmem:[%s3845_s1 + $0x28] sm:$0xff]  ;;  %v131_v43 = vld [vmem:[%s3845_s1 + $0x38] sm:$0xff] }
  0x13   :  { %252 = vmatprep.subr.mxu1 %v2761_v1  ;;  %2591 = vmatpush3.msra.mxu0 %v83_v51  ;;  %v74_v32 = vld [vmem:[%s3844_s0 + $0x180] sm:$0xff]  ;;  %v107_v35 = vmax.f32 %v58_v29, 0.0  ;;  %v2527_v45 = vld [vmem:[%s3846_s2 + $0x10] sm:$0xff]   ;;  %v133_v46 = vld [vmem:[%s3845_s1 + $0x48] sm:$0xff] }
  0x14   :  { %253 = vmatpush1.msra.mxu1 %v115_v49  ;;  %2592 = vmatprep.subr.mxu0 %v98_v54  ;;  %v124_v37 = vld [vmem:[%s3845_s1] sm:$0xff]  ;;  %v123_v38 = vmax.f32 %v74_v32, 0.0  ;;  %v130_v48 = vld [vmem:[%s3845_s1 + $0x30] sm:$0xff]  ;;  %v135_v49 = vld [vmem:[%s3845_s1 + $0x58] sm:$0xff]  ;;  %v2329_v50 = vunpack.c.h.bf16 %v2527_v45 }
  0x15   :  { %254 = vmatprep.subr.mxu1 %v2761_v1  ;;  %2593 = vmatpush3.msra.mxu0 %v82_v57  ;;  %v128_v44 = vld [vmem:[%s3845_s1 + $0x20] sm:$0xff]  ;;  %v137_v52 = vld [vmem:[%s3845_s1 + $0x68] sm:$0xff]  ;;  %v134_v53 = vld [vmem:[%s3845_s1 + $0x50] sm:$0xff]  ;;  %v2328_v57 = vunpack.c.l.bf16 %v2527_v45 }
  0x16   :  { %255 = vmatpush1.msra.mxu1 %v114_v55  ;;  %2594 = vmatprep.subr.mxu0 %v97_v60  ;;  %v132_v51 = vld [vmem:[%s3845_s1 + $0x40] sm:$0xff]  ;;  %v139_v54 = vld [vmem:[%s3845_s1 + $0x78] sm:$0xff]  ;;  %v138_v56 = vld [vmem:[%s3845_s1 + $0x70] sm:$0xff] }
  0x17   :  { %256 = vmatprep.subr.mxu1 %v2761_v1  ;;  %2595 = vmatpush3.msra.mxu0 %v81_v63  ;;  %v136_v55 = vld [vmem:[%s3845_s1 + $0x60] sm:$0xff]  ;;  %v2526_v58 = vld [vmem:[%s3846_s2 + $0x8] sm:$0xff]   ;;  %v3037_v2 = vld [vmem:[%s3847_s4 + $0x2f0] sm:$0xff] }
  0x18   :  { %257 = vmatpush1.msra.mxu1 %v113_v61  ;;  %2596 = vmatprep.subr.mxu0 %v96_v3  ;;  %v2325_v59 = vunpack.c.h.bf16 %v2526_v58  ;;  %v2324_v60 = vunpack.c.l.bf16 %v2526_v58  ;;  %v2319_v61 = vld [vmem:[%s3846_s2] sm:$0xff]   ;;  %v541_v0 = vld [vmem:[%s3847_s4 + $0x2e8] sm:$0xff]  ;;  %v538_v3 = vld [vmem:[%s3847_s4 + $0x2d0] sm:$0xff]  ;;  %v828_v58 = vunpack.c.l.bf16 %v3037_v2 }
  0x19   :  { %258 = vmatprep.subr.mxu1 %v2761_v1  ;;  %2597 = vmatpush3.msra.mxu0 %v80_v6  ;;  %v2321_v62 = vunpack.c.h.bf16 %v2319_v61  ;;  %v2320_v63 = vunpack.c.l.bf16 %v2319_v61  ;;  %v827_v5 = vunpack.c.h.bf16 %v541_v0  ;;  %v829_v6 = vunpack.c.h.bf16 %v3037_v2  ;;  %v535_v7 = vld [vmem:[%s3847_s4 + $0x2b8] sm:$0xff]  ;;  %v529_v13 = vld [vmem:[%s3847_s4 + $0x288] sm:$0xff]  ;;  %v514_v28 = vld [vmem:[%s3847_s4 + $0x210] sm:$0xff] }
  0x1a   :  { %259 = vmatpush1.msra.mxu1 %v112_v4  ;;  %2598 = vmatprep.subr.mxu0 %v95_v9  ;;  %v826_v4 = vunpack.c.l.bf16 %v541_v0  ;;  %v820_v8 = vunpack.c.l.bf16 %v538_v3  ;;  %v821_v9 = vunpack.c.h.bf16 %v538_v3  ;;  %v815_v11 = vunpack.c.h.bf16 %v535_v7  ;;  %v523_v19 = vld [vmem:[%s3847_s4 + $0x258] sm:$0xff]  ;;  %v517_v25 = vld [vmem:[%s3847_s4 + $0x228] sm:$0xff] }
  0x1b   :  { %260 = vmatprep.subr.mxu1 %v2761_v1  ;;  %2599 = vmatpush3.msra.mxu0 %v79_v12  ;;  %v814_v12 = vunpack.c.l.bf16 %v535_v7  ;;  %v803_v17 = vunpack.c.h.bf16 %v529_v13  ;;  %v791_v23 = vunpack.c.h.bf16 %v523_v19  ;;  %v779_v29 = vunpack.c.h.bf16 %v517_v25  ;;  %v533_v3 = vld [vmem:[%s3847_s4 + $0x2a8] sm:$0xff] }
  0x1c   :  { %261 = vmatpush1.msra.mxu1 %v111_v10  ;;  %2600 = vmatprep.subr.mxu0 %v94_v15  ;;  %v532_v10 = vld [vmem:[%s3847_s4 + $0x2a0] sm:$0xff]  ;;  %v773_v32 = vunpack.c.h.bf16 %v514_v28 }
  0x1d   :  { %262 = vmatprep.subr.mxu1 %v2761_v1  ;;  %2601 = vmatpush3.msra.mxu0 %v78_v18  ;;  %v809_v14 = vunpack.c.h.bf16 %v532_v10  ;;  %v808_v15 = vunpack.c.l.bf16 %v532_v10  ;;  %v802_v18 = vunpack.c.l.bf16 %v529_v13  ;;  %v811_v10 = vunpack.c.h.bf16 %v533_v3 }
  0x1e   :  { %263 = vmatpush1.msra.mxu1 %v110_v16  ;;  %2602 = vmatprep.subr.mxu0 %v93_v21  ;;  %v526_v16 = vld [vmem:[%s3847_s4 + $0x270] sm:$0xff]  ;;  %v810_v13 = vunpack.c.l.bf16 %v533_v3 }
  0x1f   :  { %264 = vmatprep.subr.mxu1 %v2761_v1  ;;  %2603 = vmatpush3.msra.mxu0 %v77_v24  ;;  %v797_v20 = vunpack.c.h.bf16 %v526_v16  ;;  %v796_v21 = vunpack.c.l.bf16 %v526_v16  ;;  %v790_v24 = vunpack.c.l.bf16 %v523_v19  ;;  %v524_v19 = vld [vmem:[%s3847_s4 + $0x260] sm:$0xff]  ;;  %v490_v3 = vld [vmem:[%s3847_s4 + $0x150] sm:$0xff] }
  0x20   :  { %265 = vmatpush1.msra.mxu1 %v109_v22  ;;  %2604 = vmatprep.subr.mxu0 %v92_v26  ;;  %v520_v22 = vld [vmem:[%s3847_s4 + $0x240] sm:$0xff] }
  0x21   :  { %266 = vmatprep.subr.mxu1 %v2761_v1  ;;  %2605 = vmatpush3.msra.mxu0 %v76_v30  ;;  %v785_v26 = vunpack.c.h.bf16 %v520_v22  ;;  %v778_v30 = vunpack.c.l.bf16 %v517_v25  ;;  %v792_v25 = vunpack.c.l.bf16 %v524_v19 }
  0x22   :  { %267 = vmatpush1.msra.mxu1 %v108_v27  ;;  %2606 = vmatprep.subr.mxu0 %v91_v31  ;;  %v784_v27 = vunpack.c.l.bf16 %v520_v22  ;;  %v511_v31 = vld [vmem:[%s3847_s4 + $0x1f8] sm:$0xff] }
  0x23   :  { %268 = vmatprep.subr.mxu1 %v2761_v1  ;;  %217 = vmatprep.mubr.f32.mxu0 %v125_v34  ;;  %v508_v34 = vld [vmem:[%s3847_s4 + $0x1e0] sm:$0xff]  ;;  %v766_v36 = vunpack.c.l.bf16 %v511_v31 }
  0x24   :  { %2607 = vmatpush3.msra.mxu0 %v75_v33  ;;  %269 = vmatpush1.msra.mxu1 %v107_v35  ;;  %v772_v33 = vunpack.c.l.bf16 %v514_v28  ;;  %v767_v35 = vunpack.c.h.bf16 %v511_v31 }
  0x25   :  { %218 = vmatmul.mubr.f32.vlgmr.msra.gmra.mxu0 %v124_v37  ;;  %300 = vmatprep.subr.mxu1 %v2761_v1  ;;  %v505_v37 = vld [vmem:[%s3847_s4 + $0x1c8] sm:$0xff] }
  0x26   :  { %301 = vmatpush2.msra.mxu1 %v123_v38  ;;  %2308 = vmatprep.mubr.msk.f32.mxu1 %vm140_vm0, %v127_v39  ;;  %v761_v38 = vunpack.c.h.bf16 %v508_v34  ;;  %v760_v39 = vunpack.c.l.bf16 %v508_v34 }
  0x27   :  { %303 = vmatmul.mubr.f32.vlgmr.msra.gmra.mxu1 %v126_v40  ;;  %222 = vmatprep.mubr.f32.mxu0 %v129_v41  ;;  %v502_v40 = vld [vmem:[%s3847_s4 + $0x1b0] sm:$0xff]  ;;  %v755_v41 = vunpack.c.h.bf16 %v505_v37 }
  0x28   :  { %2309 = vmatprep.mubr.msk.f32.mxu1 %vm140_vm0, %v131_v43  ;;  %2737 = vmatprep.subr.mxu0 %v2333_v42  ;;  %v749_v43 = vunpack.c.h.bf16 %v502_v40 }
  0x29   :  { %223 = vmatmul.mubr.f32.gmra.mxu0 %v128_v44  ;;  %1024 = vmatprep.subr.mxu1 %v827_v5  ;;  %v748_v44 = vunpack.c.l.bf16 %v502_v40 }
  0x2a   :  { %227 = vmatprep.mubr.f32.mxu0 %v133_v46  ;;  %2738 = vmatpush3.msra.mxu0 %v2333_v42  ;;  %v754_v42 = vunpack.c.l.bf16 %v505_v37 }
  0x2b   :  { %308 = vmatmul.mubr.f32.gmra.mxu1 %v130_v48  ;;  %2739 = vmatprep.subr.mxu0 %v2332_v47 }
  0x2c   :  { %2310 = vmatprep.mubr.msk.f32.mxu1 %vm140_vm0, %v135_v49  ;;  %2740 = vmatpush3.msra.mxu0 %v2332_v47 }
  0x2d   :  { %228 = vmatmul.mubr.f32.gmra.mxu0 %v132_v51  ;;  %2741 = vmatprep.subr.mxu0 %v2329_v50 }
  0x2e   :  { %232 = vmatprep.mubr.f32.mxu0 %v137_v52  ;;  %2742 = vmatpush3.msra.mxu0 %v2329_v50 }
  0x2f   :  { %313 = vmatmul.mubr.f32.gmra.mxu1 %v134_v53  ;;  %2743 = vmatprep.subr.mxu0 %v2328_v57 }
  0x30   :  { %2311 = vmatprep.mubr.msk.f32.mxu1 %vm140_vm0, %v139_v54  ;;  %2744 = vmatpush3.msra.mxu0 %v2328_v57  ;;  %v539_v54 = vld [vmem:[%s3847_s4 + $0x2d8] sm:$0xff] }
  0x31   :  { %233 = vmatmul.mubr.f32.gmra.mxu0 %v136_v55  ;;  %2745 = vmatprep.subr.mxu0 %v2325_v59  ;;  %v823_v61 = vunpack.c.h.bf16 %v539_v54  ;;  %v822_v0 = vunpack.c.l.bf16 %v539_v54 }
  0x32   :  { %2746 = vmatpush3.msra.mxu0 %v2325_v59  ;;  %1025 = vmatpush1.msra.mxu1 %v826_v4  ;;  %v536_v59 = vld [vmem:[%s3847_s4 + $0x2c0] sm:$0xff] }
  0x33   :  { %318 = vmatmul.mubr.f32.gmra.mxu1 %v138_v56  ;;  %2747 = vmatprep.subr.mxu0 %v2324_v60  ;;  %v817_v5 = vunpack.c.h.bf16 %v536_v59  ;;  %v816_v2 = vunpack.c.l.bf16 %v536_v59  ;;  %v493_v59 = vld [vmem:[%s3847_s4 + $0x168] sm:$0xff] }
  0x34   :  { %1088 = vmatprep.mubr.f32.mxu1 %v2761_v1  ;;  %2748 = vmatpush3.msra.mxu0 %v2324_v60 }
  0x35   :  { %2749 = vmatprep.subr.mxu0 %v2321_v62  ;;  %1026 = vmatprep.subr.mxu1 %v821_v9 }
  0x36   :  { %2750 = vmatpush3.msra.mxu0 %v2321_v62  ;;  %1027 = vmatpush1.msra.mxu1 %v820_v8  ;;  %v530_v8 = vld [vmem:[%s3847_s4 + $0x290] sm:$0xff] }
  0x37   :  { %2751 = vmatprep.subr.mxu0 %v2320_v63  ;;  %1028 = vmatprep.subr.mxu1 %v815_v11  ;;  %v805_v16 = vunpack.c.h.bf16 %v530_v8 }
  0x38   :  { %2752 = vmatpush3.msra.mxu0 %v2320_v63  ;;  %1029 = vmatpush1.msra.mxu1 %v814_v12 }
  0x39   :  { %1095 = vmatprep.subr.mxu0 %v829_v6  ;;  %1030 = vmatprep.subr.mxu1 %v809_v14  ;;  %v527_v14 = vld [vmem:[%s3847_s4 + $0x278] sm:$0xff] }
  0x3a   :  { %1031 = vmatpush1.msra.mxu1 %v808_v15  ;;  %v798_v22 = vunpack.c.l.bf16 %v527_v14 }
  0x3b   :  { %1032 = vmatprep.subr.mxu1 %v803_v17 }
  0x3c   :  { %1033 = vmatpush1.msra.mxu1 %v802_v18  ;;  %v804_v18 = vunpack.c.l.bf16 %v530_v8 }
  0x3d   :  { %1034 = vmatprep.subr.mxu1 %v797_v20 }
  0x3e   :  { %1035 = vmatpush1.msra.mxu1 %v796_v21  ;;  %v799_v21 = vunpack.c.h.bf16 %v527_v14  ;;  %v484_v14 = vld [vmem:[%s3847_s4 + $0x120] sm:$0xff] }
  0x3f   :  { %1036 = vmatprep.subr.mxu1 %v791_v23  ;;  %v521_v23 = vld [vmem:[%s3847_s4 + $0x248] sm:$0xff] }
  0x40   :  { %1037 = vmatpush1.msra.mxu1 %v790_v24  ;;  %v793_v24 = vunpack.c.h.bf16 %v524_v19  ;;  %v786_v28 = vunpack.c.l.bf16 %v521_v23  ;;  %v531_v19 = vld [vmem:[%s3847_s4 + $0x298] sm:$0xff] }
  0x41   :  { %1038 = vmatprep.subr.mxu1 %v785_v26  ;;  %v518_v26 = vld [vmem:[%s3847_s4 + $0x230] sm:$0xff] }
  0x42   :  { %1039 = vmatpush1.msra.mxu1 %v784_v27  ;;  %v787_v27 = vunpack.c.h.bf16 %v521_v23  ;;  %v780_v31 = vunpack.c.l.bf16 %v518_v26 }
  0x43   :  { %1040 = vmatprep.subr.mxu1 %v779_v29  ;;  %v515_v29 = vld [vmem:[%s3847_s4 + $0x218] sm:$0xff] }
  0x44   :  { %1041 = vmatpush1.msra.mxu1 %v778_v30  ;;  %v781_v30 = vunpack.c.h.bf16 %v518_v26  ;;  %v774_v34 = vunpack.c.l.bf16 %v515_v29  ;;  %v478_v26 = vld [vmem:[%s3847_s4 + $0xf0] sm:$0xff] }
  0x45   :  { %1042 = vmatprep.subr.mxu1 %v773_v32  ;;  %v512_v32 = vld [vmem:[%s3847_s4 + $0x200] sm:$0xff] }
  0x46   :  { %1043 = vmatpush1.msra.mxu1 %v772_v33  ;;  %v775_v33 = vunpack.c.h.bf16 %v515_v29  ;;  %v768_v37 = vunpack.c.l.bf16 %v512_v32  ;;  %v806_v29 = vunpack.c.l.bf16 %v531_v19 }
  0x47   :  { %1044 = vmatprep.subr.mxu1 %v767_v35  ;;  %v509_v35 = vld [vmem:[%s3847_s4 + $0x1e8] sm:$0xff] }
  0x48   :  { %1045 = vmatpush1.msra.mxu1 %v766_v36  ;;  %v769_v36 = vunpack.c.h.bf16 %v512_v32  ;;  %v762_v40 = vunpack.c.l.bf16 %v509_v35  ;;  %v475_v32 = vld [vmem:[%s3847_s4 + $0xd8] sm:$0xff] }
  0x49   :  { %1046 = vmatprep.subr.mxu1 %v761_v38  ;;  %v506_v38 = vld [vmem:[%s3847_s4 + $0x1d0] sm:$0xff] }
  0x4a   :  { %1047 = vmatpush1.msra.mxu1 %v760_v39  ;;  %v763_v39 = vunpack.c.h.bf16 %v509_v35 }
  0x4b   :  { %1048 = vmatprep.subr.mxu1 %v755_v41  ;;  %v503_v41 = vld [vmem:[%s3847_s4 + $0x1b8] sm:$0xff] }
  0x4c   :  { %1049 = vmatpush1.msra.mxu1 %v754_v42  ;;  %v757_v42 = vunpack.c.h.bf16 %v506_v38 }
  0x4d   :  { %1050 = vmatprep.subr.mxu1 %v749_v43  ;;  %v756_v43 = vunpack.c.l.bf16 %v506_v38  ;;  %v472_v38 = vld [vmem:[%s3847_s4 + $0xc0] sm:$0xff] }
  0x4e   :  { %1051 = vmatpush1.msra.mxu1 %v748_v44  ;;  %v751_v44 = vunpack.c.h.bf16 %v503_v41 }
  0xe5   :  { %v2608_v45 = vpop.f32.mrf.mxu0 }
  0xe7   :  { %v2609_v46 = vpop.f32.mrf.mxu0  ;;  %v304_v47 = vpop.f32.mrf.mxu1 }
  0xe8   :  { %v2610_v48 = vadd.f32 %v2609_v46, %v2608_v45  ;;  %v750_v45 = vunpack.c.l.bf16 %v503_v41  ;;  %v499_v46 = vld [vmem:[%s3847_s4 + $0x198] sm:$0xff] }
  0xe9   :  { %v2611_v49 = vpop.f32.mrf.mxu0  ;;  %v306_v50 = vpop.f32.mrf.mxu1 }
  0xea   :  { %v305_v51 = vadd.f32 %v2610_v48, %v304_v47  ;;  %v500_v47 = vld [vmem:[%s3847_s4 + $0x1a0] sm:$0xff]  ;;  %v743_v48 = vunpack.c.h.bf16 %v499_v46  ;;  %v742_v50 = vunpack.c.l.bf16 %v499_v46  ;;  %v689_v46 = vunpack.c.h.bf16 %v472_v38 }
  0xeb   :  { %v2612_v52 = vpop.f32.mrf.mxu0  ;;  %v309_v53 = vpop.f32.mrf.mxu1 }
  0xec   :  { %v2613_v55 = vadd.f32 %v2612_v52, %v2611_v49  ;;  %2753 = vmatprep.mubr.msk.f32.mxu0 %vm346_vm1, %v305_v51  ;;  %v745_v49 = vunpack.c.h.bf16 %v500_v47  ;;  %v744_v51 = vunpack.c.l.bf16 %v500_v47  ;;  %v496_v52 = vld [vmem:[%s3847_s4 + $0x180] sm:$0xff]  ;;  %1052 = vmatprep.subr.mxu1 %v743_v48  ;;  %v688_v48 = vunpack.c.l.bf16 %v472_v38  ;;  %v491_v38 = vld [vmem:[%s3847_s4 + $0x158] sm:$0xff] }
  0xed   :  { %v311_v56 = vpop.f32.mrf.mxu1  ;;  %v2614_v57 = vpop.f32.mrf.mxu0  ;;  %v737_v54 = vunpack.c.h.bf16 %v496_v52  ;;  %1053 = vmatpush1.msra.mxu1 %v742_v50  ;;  %v466_v50 = vld [vmem:[%s3847_s4 + $0x90] sm:$0xff] }
  0xee   :  { %v310_v60 = vadd.f32 %v2613_v55, %v309_v53  ;;  %v497_v53 = vld [vmem:[%s3847_s4 + $0x188] sm:$0xff]  ;;  %v736_v56 = vunpack.c.l.bf16 %v496_v52 }
  0xef   :  { %v2615_v62 = vpop.f32.mrf.mxu0  ;;  %v314_v63 = vpop.f32.mrf.mxu1  ;;  %v739_v55 = vunpack.c.h.bf16 %v497_v53  ;;  %1054 = vmatprep.subr.mxu1 %v737_v54 }
  0xf0   :  { %2754 = vmatmul.mubr.msk.f32.vlgmr.msra.gmra.mxu0 %vm346_vm1, %v310_v60  ;;  %v2616_v4 = vadd.f32 %v2615_v62, %v2614_v57  ;;  %v738_v57 = vunpack.c.l.bf16 %v497_v53  ;;  %1055 = vmatpush1.msra.mxu1 %v736_v56  ;;  %v3145_v62 = vld [vmem:[%s3848_s3] ss:$0 sm:$0xff]  ;;  %v463_v56 = vld [vmem:[%s3847_s4 + $0x78] sm:$0xff] }
  0xf1   :  { %v2617_v6 = vpop.f32.mrf.mxu0  ;;  %v316_v7 = vpop.f32.mrf.mxu1  ;;  %1096 = vmatpush1.msra.mxu0 %v828_v58  ;;  %v543_v58 = vld [vmem:[%s3847_s4 + $0x2f8] sm:$0xff] }
  0xf2   :  { %v315_v9 = vadd.f32 %v2616_v4, %v314_v63  ;;  %1097 = vmatprep.subr.mxu0 %v823_v61  ;;  %v831_v60 = vunpack.c.h.bf16 %v543_v58  ;;  %v731_v61 = vunpack.c.h.bf16 %v493_v59  ;;  %v537_v7 = vld [vmem:[%s3847_s4 + $0x2c8] sm:$0xff] }
  0xf3   :  { %v2618_v11 = vpop.f32.mrf.mxu0  ;;  %v319_v12 = vpop.f32.mrf.mxu1  ;;  %1098 = vmatpush1.msra.mxu0 %v822_v0  ;;  %v540_v0 = vld [vmem:[%s3847_s4 + $0x2e0] sm:$0xff] }
  0xf4   :  { %v2619_v15 = vadd.f32 %v2618_v11, %v2617_v6  ;;  %2756 = vmatprep.mubr.msk.f32.mxu0 %vm346_vm1, %v315_v9  ;;  %1099 = vmatprep.subr.mxu0 %v817_v5  ;;  %v830_v5 = vunpack.c.l.bf16 %v543_v58  ;;  %v730_v6 = vunpack.c.l.bf16 %v493_v59  ;;  %v825_v9 = vunpack.c.h.bf16 %v540_v0 }
  0xf5   :  { %v321_v17 = vpop.f32.mrf.mxu1  ;;  %1100 = vmatpush1.msra.mxu0 %v816_v2  ;;  %1166 = vmatprep.subr.mxu1 %v831_v60  ;;  %v487_v2 = vld [vmem:[%s3847_s4 + $0x138] sm:$0xff]  ;;  %v824_v11 = vunpack.c.l.bf16 %v540_v0  ;;  %v677_v58 = vunpack.c.h.bf16 %v466_v50  ;;  %v676_v60 = vunpack.c.l.bf16 %v466_v50 }
  0xf6   :  { %v320_v20 = vadd.f32 %v2619_v15, %v319_v12  ;;  %1101 = vmatprep.subr.mxu0 %v811_v10  ;;  %v725_v10 = vunpack.c.h.bf16 %v490_v3  ;;  %v724_v12 = vunpack.c.l.bf16 %v490_v3  ;;  %v819_v15 = vunpack.c.h.bf16 %v537_v7 }
  0xf7   :  { %1102 = vmatpush1.msra.mxu0 %v810_v13  ;;  %v534_v13 = vld [vmem:[%s3847_s4 + $0x2b0] sm:$0xff]  ;;  %v818_v17 = vunpack.c.l.bf16 %v537_v7  ;;  %v671_v3 = vunpack.c.h.bf16 %v463_v56  ;;  %v457_v7 = vld [vmem:[%s3847_s4 + $0x48] sm:$0xff] }
  0xf8   :  { %2757 = vmatmul.mubr.msk.f32.gmra.mxu0 %vm346_vm1, %v320_v20  ;;  %1103 = vmatprep.subr.mxu0 %v805_v16  ;;  %v719_v16 = vunpack.c.h.bf16 %v487_v2  ;;  %v481_v20 = vld [vmem:[%s3847_s4 + $0x108] sm:$0xff]  ;;  %v812_v23 = vunpack.c.l.bf16 %v534_v13 }
  0xf9   :  { %1104 = vmatpush1.msra.mxu0 %v804_v18  ;;  %1159 = vmatprep.mubr.f32.mxu0 %v2761_v1  ;;  %v718_v18 = vunpack.c.l.bf16 %v487_v2 }
  0xfa   :  { %1105 = vmatprep.subr.mxu0 %v799_v21  ;;  %v813_v21 = vunpack.c.h.bf16 %v534_v13  ;;  %v454_v13 = vld [vmem:[%s3847_s4 + $0x30] sm:$0xff] }
  0xfb   :  { %1106 = vmatpush1.msra.mxu0 %v798_v22  ;;  %v713_v22 = vunpack.c.h.bf16 %v484_v14 }
  0xfc   :  { %1107 = vmatprep.subr.mxu0 %v793_v24  ;;  %v712_v24 = vunpack.c.l.bf16 %v484_v14 }
  0xfd   :  { %1108 = vmatpush1.msra.mxu0 %v792_v25  ;;  %v528_v25 = vld [vmem:[%s3847_s4 + $0x280] sm:$0xff] }
  0xfe   :  { %1109 = vmatprep.subr.mxu0 %v787_v27  ;;  %v807_v27 = vunpack.c.h.bf16 %v531_v19  ;;  %v800_v35 = vunpack.c.l.bf16 %v528_v25  ;;  %v451_v19 = vld [vmem:[%s3847_s4 + $0x18] sm:$0xff] }
  0xff   :  { %1110 = vmatpush1.msra.mxu0 %v786_v28  ;;  %v707_v28 = vunpack.c.h.bf16 %v481_v20 }
 0x100   :  { %1111 = vmatprep.subr.mxu0 %v781_v30  ;;  %v706_v30 = vunpack.c.l.bf16 %v481_v20 }
 0x101   :  { %1112 = vmatpush1.msra.mxu0 %v780_v31  ;;  %v525_v31 = vld [vmem:[%s3847_s4 + $0x268] sm:$0xff] }
 0x102   :  { %1113 = vmatprep.subr.mxu0 %v775_v33  ;;  %v801_v33 = vunpack.c.h.bf16 %v528_v25  ;;  %v794_v41 = vunpack.c.l.bf16 %v525_v31  ;;  %v448_v25 = vld [vmem:[%s3847_s4] sm:$0xff] }
 0x103   :  { %1114 = vmatpush1.msra.mxu0 %v774_v34  ;;  %v701_v34 = vunpack.c.h.bf16 %v478_v26 }
 0x104   :  { %1115 = vmatprep.subr.mxu0 %v769_v36  ;;  %v700_v36 = vunpack.c.l.bf16 %v478_v26 }
 0x105   :  { %1116 = vmatpush1.msra.mxu0 %v768_v37  ;;  %v522_v37 = vld [vmem:[%s3847_s4 + $0x250] sm:$0xff] }
 0x106   :  { %1117 = vmatprep.subr.mxu0 %v763_v39  ;;  %v795_v39 = vunpack.c.h.bf16 %v525_v31  ;;  %v788_v47 = vunpack.c.l.bf16 %v522_v37 }
 0x107   :  { %1118 = vmatpush1.msra.mxu0 %v762_v40  ;;  %v695_v40 = vunpack.c.h.bf16 %v475_v32 }
 0x108   :  { %1119 = vmatprep.subr.mxu0 %v757_v42  ;;  %v694_v42 = vunpack.c.l.bf16 %v475_v32  ;;  %v641_v32 = vunpack.c.h.bf16 %v448_v25 }
 0x109   :  { %1120 = vmatpush1.msra.mxu0 %v756_v43  ;;  %v519_v43 = vld [vmem:[%s3847_s4 + $0x238] sm:$0xff] }
 0x10a   :  { %1121 = vmatprep.subr.mxu0 %v751_v44  ;;  %v469_v44 = vld [vmem:[%s3847_s4 + $0xa8] sm:$0xff]  ;;  %v782_v53 = vunpack.c.l.bf16 %v519_v43 }
 0x10b   :  { %1122 = vmatpush1.msra.mxu0 %v750_v45  ;;  %v789_v45 = vunpack.c.h.bf16 %v522_v37  ;;  %v683_v52 = vunpack.c.h.bf16 %v469_v44  ;;  %v682_v54 = vunpack.c.l.bf16 %v469_v44  ;;  %v640_v37 = vunpack.c.l.bf16 %v448_v25  ;;  %v467_v25 = vld [vmem:[%s3847_s4 + $0x98] sm:$0xff] }
 0x10c   :  { %1123 = vmatprep.subr.mxu0 %v745_v49  ;;  %v516_v49 = vld [vmem:[%s3847_s4 + $0x220] sm:$0xff] }
 0x10d   :  { %1124 = vmatpush1.msra.mxu0 %v744_v51  ;;  %v783_v51 = vunpack.c.h.bf16 %v519_v43  ;;  %v776_v59 = vunpack.c.l.bf16 %v516_v49 }
 0x10e   :  { %1125 = vmatprep.subr.mxu0 %v739_v55  ;;  %v513_v55 = vld [vmem:[%s3847_s4 + $0x208] sm:$0xff] }
 0x10f   :  { %1126 = vmatpush1.msra.mxu0 %v738_v57  ;;  %v777_v57 = vunpack.c.h.bf16 %v516_v49  ;;  %v771_v0 = vunpack.c.h.bf16 %v513_v55  ;;  %v726_v49 = vunpack.c.l.bf16 %v491_v38 }
 0x110   :  { %1237 = vmatprep.subr.mxu0 %v731_v61  ;;  %v510_v61 = vld [vmem:[%s3847_s4 + $0x1f0] sm:$0xff] }
 0x111   :  { %v765_v2 = vunpack.c.h.bf16 %v510_v61 }
 0x1b0   :  { %v2755_v63 = vpop.f32.mrf.mxu0 }
 0x1b1   :  { %v431_v4 = vadd.f32 %v2755_v63, %v3145_v62  ;;  %v460_v63 = vld [vmem:[%s3847_s4 + $0x60] sm:$0xff] }
 0x1b2   :  { %v425_v26 = vpop.f32.mrf.mxu0 }
 0x1b3   :  { %v3160_v8 = vmax.f32 %v431_v4, 0.0  ;;  %v770_v4 = vunpack.c.l.bf16 %v513_v55 }
 0x1b5   :  { %1089 = vmatmul.mubr.f32.vlgmr.msra.gmra.mxu1 %v3160_v8  ;;  %1160 = vmatmul.mubr.f32.vlgmr.msra.gmra.mxu0 %v3160_v8 }
 0x1b6   :  { %1167 = vmatpush1.msra.mxu1 %v830_v5  ;;  %1238 = vmatpush1.msra.mxu0 %v730_v6  ;;  %v670_v5 = vunpack.c.l.bf16 %v463_v56  ;;  %v507_v6 = vld [vmem:[%s3847_s4 + $0x1d8] sm:$0xff]  ;;  %v482_v56 = vld [vmem:[%s3847_s4 + $0x110] sm:$0xff] }
 0x1b7   :  { %1168 = vmatprep.subr.mxu1 %v825_v9  ;;  %1239 = vmatprep.subr.mxu0 %v725_v10  ;;  %v665_v9 = vunpack.c.h.bf16 %v460_v63  ;;  %v764_v10 = vunpack.c.l.bf16 %v510_v61  ;;  %v759_v14 = vunpack.c.h.bf16 %v507_v6 }
 0x1b8   :  { %1169 = vmatpush1.msra.mxu1 %v824_v11  ;;  %1240 = vmatpush1.msra.mxu0 %v724_v12  ;;  %v664_v11 = vunpack.c.l.bf16 %v460_v63  ;;  %v504_v12 = vld [vmem:[%s3847_s4 + $0x1c0] sm:$0xff]  ;;  %v479_v63 = vld [vmem:[%s3847_s4 + $0xf8] sm:$0xff] }
 0x1b9   :  { %1170 = vmatprep.subr.mxu1 %v819_v15  ;;  %1241 = vmatprep.subr.mxu0 %v719_v16  ;;  %v659_v15 = vunpack.c.h.bf16 %v457_v7  ;;  %v758_v16 = vunpack.c.l.bf16 %v507_v6  ;;  %v753_v20 = vunpack.c.h.bf16 %v504_v12 }
 0x1ba   :  { %1171 = vmatpush1.msra.mxu1 %v818_v17  ;;  %1242 = vmatpush1.msra.mxu0 %v718_v18  ;;  %v658_v17 = vunpack.c.l.bf16 %v457_v7  ;;  %v501_v18 = vld [vmem:[%s3847_s4 + $0x1a8] sm:$0xff]  ;;  %v476_v7 = vld [vmem:[%s3847_s4 + $0xe0] sm:$0xff] }
 0x1bb   :  { %1172 = vmatprep.subr.mxu1 %v813_v21  ;;  %1243 = vmatprep.subr.mxu0 %v713_v22  ;;  %v653_v21 = vunpack.c.h.bf16 %v454_v13  ;;  %v752_v22 = vunpack.c.l.bf16 %v504_v12 }
 0x1bc   :  { %1173 = vmatpush1.msra.mxu1 %v812_v23  ;;  %1244 = vmatpush1.msra.mxu0 %v712_v24  ;;  %v652_v23 = vunpack.c.l.bf16 %v454_v13  ;;  %v498_v24 = vld [vmem:[%s3847_s4 + $0x190] sm:$0xff]  ;;  %v473_v13 = vld [vmem:[%s3847_s4 + $0xc8] sm:$0xff] }
 0x1bd   :  { %1174 = vmatprep.subr.mxu1 %v807_v27  ;;  %1245 = vmatprep.subr.mxu0 %v707_v28  ;;  %v747_v27 = vunpack.c.h.bf16 %v501_v18  ;;  %v647_v28 = vunpack.c.h.bf16 %v451_v19  ;;  %v741_v31 = vunpack.c.h.bf16 %v498_v24 }
 0x1be   :  { %1175 = vmatpush1.msra.mxu1 %v806_v29  ;;  %1246 = vmatpush1.msra.mxu0 %v706_v30  ;;  %v746_v29 = vunpack.c.l.bf16 %v501_v18  ;;  %v646_v30 = vunpack.c.l.bf16 %v451_v19  ;;  %v470_v19 = vld [vmem:[%s3847_s4 + $0xb0] sm:$0xff] }
 0x1bf   :  { %1176 = vmatprep.subr.mxu1 %v801_v33  ;;  %1247 = vmatprep.subr.mxu0 %v701_v34  ;;  %v426_v33 = vadd.f32 %v3145_v62, %v425_v26  ;;  %v740_v34 = vunpack.c.l.bf16 %v498_v24  ;;  %v468_v26 = vld [vmem:[%s3847_s4 + $0xa0] sm:$0xff] }
 0x1c0   :  { %1177 = vmatpush1.msra.mxu1 %v800_v35  ;;  %1248 = vmatpush1.msra.mxu0 %v700_v36  ;;  %v494_v35 = vld [vmem:[%s3847_s4 + $0x170] sm:$0xff]  ;;  %v495_v36 = vld [vmem:[%s3847_s4 + $0x178] sm:$0xff] }
 0x1c1   :  { %1178 = vmatprep.subr.mxu1 %v795_v39  ;;  %1249 = vmatprep.subr.mxu0 %v695_v40  ;;  %v492_v39 = vld [vmem:[%s3847_s4 + $0x160] sm:$0xff]  ;;  %v733_v40 = vunpack.c.h.bf16 %v494_v35  ;;  %v732_v43 = vunpack.c.l.bf16 %v494_v35  ;;  %v734_v44 = vunpack.c.l.bf16 %v495_v36  ;;  %v678_v35 = vunpack.c.l.bf16 %v467_v25 }
 0x1c2   :  { %1179 = vmatpush1.msra.mxu1 %v794_v41  ;;  %1250 = vmatpush1.msra.mxu0 %v694_v42  ;;  %v735_v41 = vunpack.c.h.bf16 %v495_v36  ;;  %v3255_v42 = vmax.f32 %v426_v33, 0.0  ;;  %v728_v50 = vunpack.c.l.bf16 %v492_v39  ;;  %v679_v33 = vunpack.c.h.bf16 %v467_v25  ;;  %v581_v25 = vld [vmem:[%s3847_s4 + $0x428] sm:$0xff] }
 0x1c3   :  { %1180 = vmatprep.subr.mxu1 %v789_v45  ;;  %1251 = vmatprep.subr.mxu0 %v689_v46  ;;  %v488_v45 = vld [vmem:[%s3847_s4 + $0x140] sm:$0xff]  ;;  %v489_v46 = vld [vmem:[%s3847_s4 + $0x148] sm:$0xff]  ;;  %v680_v36 = vunpack.c.l.bf16 %v468_v26 }
 0x1c4   :  { %1181 = vmatpush1.msra.mxu1 %v788_v47  ;;  %1252 = vmatpush1.msra.mxu0 %v688_v48  ;;  %v727_v47 = vunpack.c.h.bf16 %v491_v38  ;;  %v729_v48 = vunpack.c.h.bf16 %v492_v39  ;;  %v720_v55 = vunpack.c.l.bf16 %v488_v45  ;;  %v462_v38 = vld [vmem:[%s3847_s4 + $0x70] sm:$0xff] }
 0x1c5   :  { %1182 = vmatprep.subr.mxu1 %v783_v51  ;;  %1253 = vmatprep.subr.mxu0 %v683_v52  ;;  %v485_v51 = vld [vmem:[%s3847_s4 + $0x128] sm:$0xff]  ;;  %v486_v52 = vld [vmem:[%s3847_s4 + $0x130] sm:$0xff] }
 0x1c6   :  { %1183 = vmatpush1.msra.mxu1 %v782_v53  ;;  %1254 = vmatpush1.msra.mxu0 %v682_v54  ;;  %v721_v53 = vunpack.c.h.bf16 %v488_v45  ;;  %v723_v54 = vunpack.c.h.bf16 %v489_v46  ;;  %v716_v61 = vunpack.c.l.bf16 %v486_v52  ;;  %v459_v45 = vld [vmem:[%s3847_s4 + $0x58] sm:$0xff] }
 0x1c7   :  { %1184 = vmatprep.subr.mxu1 %v777_v57  ;;  %1255 = vmatprep.subr.mxu0 %v677_v58  ;;  %v483_v57 = vld [vmem:[%s3847_s4 + $0x118] sm:$0xff]  ;;  %v715_v58 = vunpack.c.h.bf16 %v485_v51 }
 0x1c8   :  { %1185 = vmatpush1.msra.mxu1 %v776_v59  ;;  %1256 = vmatpush1.msra.mxu0 %v676_v60  ;;  %v717_v59 = vunpack.c.h.bf16 %v486_v52  ;;  %v714_v60 = vunpack.c.l.bf16 %v485_v51  ;;  %v710_v6 = vunpack.c.l.bf16 %v483_v57  ;;  %v456_v51 = vld [vmem:[%s3847_s4 + $0x40] sm:$0xff] }
 0x1c9   :  { %1186 = vmatprep.subr.mxu1 %v771_v0  ;;  %1257 = vmatprep.subr.mxu0 %v671_v3  ;;  %v480_v0 = vld [vmem:[%s3847_s4 + $0x100] sm:$0xff]  ;;  %v709_v3 = vunpack.c.h.bf16 %v482_v56 }
 0x1ca   :  { %1187 = vmatpush1.msra.mxu1 %v770_v4  ;;  %1258 = vmatpush1.msra.mxu0 %v670_v5  ;;  %v711_v4 = vunpack.c.h.bf16 %v483_v57  ;;  %v708_v5 = vunpack.c.l.bf16 %v482_v56  ;;  %v704_v12 = vunpack.c.l.bf16 %v480_v0  ;;  %v453_v56 = vld [vmem:[%s3847_s4 + $0x28] sm:$0xff] }
 0x1cb   :  { %1188 = vmatprep.subr.mxu1 %v765_v2  ;;  %1259 = vmatprep.subr.mxu0 %v665_v9  ;;  %v477_v2 = vld [vmem:[%s3847_s4 + $0xe8] sm:$0xff]  ;;  %v703_v9 = vunpack.c.h.bf16 %v479_v63 }
 0x1cc   :  { %1189 = vmatpush1.msra.mxu1 %v764_v10  ;;  %1260 = vmatpush1.msra.mxu0 %v664_v11  ;;  %v705_v10 = vunpack.c.h.bf16 %v480_v0  ;;  %v702_v11 = vunpack.c.l.bf16 %v479_v63  ;;  %v698_v18 = vunpack.c.l.bf16 %v477_v2  ;;  %v450_v63 = vld [vmem:[%s3847_s4 + $0x10] sm:$0xff] }
 0x1cd   :  { %1190 = vmatprep.subr.mxu1 %v759_v14  ;;  %1261 = vmatprep.subr.mxu0 %v659_v15  ;;  %v474_v14 = vld [vmem:[%s3847_s4 + $0xd0] sm:$0xff]  ;;  %v697_v15 = vunpack.c.h.bf16 %v476_v7 }
 0x1ce   :  { %1191 = vmatpush1.msra.mxu1 %v758_v16  ;;  %1262 = vmatpush1.msra.mxu0 %v658_v17  ;;  %v699_v16 = vunpack.c.h.bf16 %v477_v2  ;;  %v696_v17 = vunpack.c.l.bf16 %v476_v7  ;;  %v692_v24 = vunpack.c.l.bf16 %v474_v14  ;;  %v645_v7 = vunpack.c.h.bf16 %v450_v63 }
 0x1cf   :  { %1192 = vmatprep.subr.mxu1 %v753_v20  ;;  %1263 = vmatprep.subr.mxu0 %v653_v21  ;;  %v471_v20 = vld [vmem:[%s3847_s4 + $0xb8] sm:$0xff]  ;;  %v691_v21 = vunpack.c.h.bf16 %v473_v13 }
 0x1d0   :  { %1193 = vmatpush1.msra.mxu1 %v752_v22  ;;  %1264 = vmatpush1.msra.mxu0 %v652_v23  ;;  %v693_v22 = vunpack.c.h.bf16 %v474_v14  ;;  %v690_v23 = vunpack.c.l.bf16 %v473_v13  ;;  %v587_v13 = vld [vmem:[%s3847_s4 + $0x458] sm:$0xff] }
 0x1d1   :  { %1194 = vmatprep.subr.mxu1 %v747_v27  ;;  %1265 = vmatprep.subr.mxu0 %v647_v28  ;;  %v685_v27 = vunpack.c.h.bf16 %v470_v19  ;;  %v687_v28 = vunpack.c.h.bf16 %v471_v20 }
 0x1d2   :  { %1195 = vmatpush1.msra.mxu1 %v746_v29  ;;  %1266 = vmatpush1.msra.mxu0 %v646_v30  ;;  %v684_v29 = vunpack.c.l.bf16 %v470_v19  ;;  %v686_v30 = vunpack.c.l.bf16 %v471_v20  ;;  %v584_v19 = vld [vmem:[%s3847_s4 + $0x440] sm:$0xff] }
 0x1d3   :  { %1196 = vmatprep.subr.mxu1 %v741_v31  ;;  %1267 = vmatprep.subr.mxu0 %v641_v32  ;;  %v464_v31 = vld [vmem:[%s3847_s4 + $0x80] sm:$0xff]  ;;  %v465_v32 = vld [vmem:[%s3847_s4 + $0x88] sm:$0xff] }
 0x1d4   :  { %1197 = vmatpush1.msra.mxu1 %v740_v34  ;;  %1230 = vmatprep.mubr.f32.mxu1 %v2761_v1  ;;  %v681_v34 = vunpack.c.h.bf16 %v468_v26  ;;  %v673_v39 = vunpack.c.h.bf16 %v464_v31 }
 0x1d5   :  { %1268 = vmatpush1.msra.mxu0 %v640_v37  ;;  %1301 = vmatprep.mubr.f32.mxu0 %v2761_v1  ;;  %v461_v37 = vld [vmem:[%s3847_s4 + $0x68] sm:$0xff] }
 0x1d6   :  { %1231 = vmatmul.mubr.f32.vlgmr.msra.gmra.mxu1 %v3160_v8  ;;  %1302 = vmatmul.mubr.f32.vlgmr.msra.gmra.mxu0 %v3255_v42  ;;  %v722_v8 = vunpack.c.l.bf16 %v489_v46  ;;  %v667_v46 = vunpack.c.h.bf16 %v461_v37 }
 0x1d7   :  { %1308 = vmatprep.subr.mxu1 %v733_v40  ;;  %1379 = vmatprep.subr.mxu0 %v735_v41  ;;  %v675_v40 = vunpack.c.h.bf16 %v465_v32  ;;  %v672_v41 = vunpack.c.l.bf16 %v464_v31 }
 0x1d8   :  { %1309 = vmatpush1.msra.mxu1 %v732_v43  ;;  %1380 = vmatpush1.msra.mxu0 %v734_v44  ;;  %v674_v43 = vunpack.c.l.bf16 %v465_v32  ;;  %v458_v44 = vld [vmem:[%s3847_s4 + $0x50] sm:$0xff]  ;;  %v907_v32 = vunpack.c.h.bf16 %v581_v25 }
 0x1d9   :  { %1310 = vmatprep.subr.mxu1 %v727_v47  ;;  %1381 = vmatprep.subr.mxu0 %v729_v48  ;;  %v669_v47 = vunpack.c.h.bf16 %v462_v38  ;;  %v666_v48 = vunpack.c.l.bf16 %v461_v37  ;;  %v661_v52 = vunpack.c.h.bf16 %v458_v44 }
 0x1da   :  { %1311 = vmatpush1.msra.mxu1 %v726_v49  ;;  %1382 = vmatpush1.msra.mxu0 %v728_v50  ;;  %v668_v49 = vunpack.c.l.bf16 %v462_v38  ;;  %v455_v50 = vld [vmem:[%s3847_s4 + $0x38] sm:$0xff] }
 0x1db   :  { %1312 = vmatprep.subr.mxu1 %v721_v53  ;;  %1383 = vmatprep.subr.mxu0 %v723_v54  ;;  %v663_v53 = vunpack.c.h.bf16 %v459_v45  ;;  %v660_v54 = vunpack.c.l.bf16 %v458_v44  ;;  %v655_v57 = vunpack.c.h.bf16 %v455_v50 }
 0x1dc   :  { %1313 = vmatpush1.msra.mxu1 %v720_v55  ;;  %1384 = vmatpush1.msra.mxu0 %v722_v8  ;;  %v662_v55 = vunpack.c.l.bf16 %v459_v45  ;;  %v452_v8 = vld [vmem:[%s3847_s4 + $0x20] sm:$0xff] }
 0x1dd   :  { %1314 = vmatprep.subr.mxu1 %v715_v58  ;;  %1385 = vmatprep.subr.mxu0 %v717_v59  ;;  %v657_v58 = vunpack.c.h.bf16 %v456_v51  ;;  %v654_v59 = vunpack.c.l.bf16 %v455_v50  ;;  %v649_v0 = vunpack.c.h.bf16 %v452_v8 }
 0x1de   :  { %1315 = vmatpush1.msra.mxu1 %v714_v60  ;;  %1386 = vmatpush1.msra.mxu0 %v716_v61  ;;  %v656_v60 = vunpack.c.l.bf16 %v456_v51  ;;  %v449_v61 = vld [vmem:[%s3847_s4 + $0x8] sm:$0xff] }
 0x1df   :  { %1316 = vmatprep.subr.mxu1 %v709_v3  ;;  %1387 = vmatprep.subr.mxu0 %v711_v4  ;;  %v651_v3 = vunpack.c.h.bf16 %v453_v56  ;;  %v648_v4 = vunpack.c.l.bf16 %v452_v8  ;;  %v642_v2 = vunpack.c.l.bf16 %v449_v61 }
 0x1e0   :  { %1317 = vmatpush1.msra.mxu1 %v708_v5  ;;  %1388 = vmatpush1.msra.mxu0 %v710_v6  ;;  %v650_v5 = vunpack.c.l.bf16 %v453_v56  ;;  %v643_v6 = vunpack.c.h.bf16 %v449_v61 }
 0x1e1   :  { %1318 = vmatprep.subr.mxu1 %v703_v9  ;;  %1389 = vmatprep.subr.mxu0 %v705_v10  ;;  %v589_v9 = vld [vmem:[%s3847_s4 + $0x468] sm:$0xff]  ;;  %v590_v10 = vld [vmem:[%s3847_s4 + $0x470] sm:$0xff] }
 0x1e2   :  { %1319 = vmatpush1.msra.mxu1 %v702_v11  ;;  %1390 = vmatpush1.msra.mxu0 %v704_v12  ;;  %v644_v11 = vunpack.c.l.bf16 %v450_v63  ;;  %v586_v12 = vld [vmem:[%s3847_s4 + $0x450] sm:$0xff]  ;;  %v923_v14 = vunpack.c.h.bf16 %v589_v9 }
 0x1e3   :  { %1320 = vmatprep.subr.mxu1 %v697_v15  ;;  %1391 = vmatprep.subr.mxu0 %v699_v16  ;;  %v925_v15 = vunpack.c.h.bf16 %v590_v10  ;;  %v922_v16 = vunpack.c.l.bf16 %v589_v9  ;;  %v917_v20 = vunpack.c.h.bf16 %v586_v12 }
 0x1e4   :  { %1321 = vmatpush1.msra.mxu1 %v696_v17  ;;  %1392 = vmatpush1.msra.mxu0 %v698_v18  ;;  %v924_v17 = vunpack.c.l.bf16 %v590_v10  ;;  %v583_v18 = vld [vmem:[%s3847_s4 + $0x438] sm:$0xff]  ;;  %v556_v10 = vld [vmem:[%s3847_s4 + $0x360] sm:$0xff] }
 0x1e5   :  { %1322 = vmatprep.subr.mxu1 %v691_v21  ;;  %1393 = vmatprep.subr.mxu0 %v693_v22  ;;  %v919_v21 = vunpack.c.h.bf16 %v587_v13  ;;  %v916_v22 = vunpack.c.l.bf16 %v586_v12  ;;  %v911_v26 = vunpack.c.h.bf16 %v583_v18 }
 0x1e6   :  { %1323 = vmatpush1.msra.mxu1 %v690_v23  ;;  %1394 = vmatpush1.msra.mxu0 %v692_v24  ;;  %v918_v23 = vunpack.c.l.bf16 %v587_v13  ;;  %v580_v24 = vld [vmem:[%s3847_s4 + $0x420] sm:$0xff] }
 0x1e7   :  { %1324 = vmatprep.subr.mxu1 %v685_v27  ;;  %1395 = vmatprep.subr.mxu0 %v687_v28  ;;  %v913_v27 = vunpack.c.h.bf16 %v584_v19  ;;  %v910_v28 = vunpack.c.l.bf16 %v583_v18  ;;  %v905_v31 = vunpack.c.h.bf16 %v580_v24  ;;  %v857_v18 = vunpack.c.h.bf16 %v556_v10 }
 0x1e8   :  { %1325 = vmatpush1.msra.mxu1 %v684_v29  ;;  %1396 = vmatpush1.msra.mxu0 %v686_v30  ;;  %v912_v29 = vunpack.c.l.bf16 %v584_v19  ;;  %v578_v30 = vld [vmem:[%s3847_s4 + $0x410] sm:$0xff] }
 0x1e9   :  { %1326 = vmatprep.subr.mxu1 %v679_v33  ;;  %1397 = vmatprep.subr.mxu0 %v681_v34  ;;  %v904_v33 = vunpack.c.l.bf16 %v580_v24  ;;  %v906_v34 = vunpack.c.l.bf16 %v581_v25  ;;  %v901_v38 = vunpack.c.h.bf16 %v578_v30  ;;  %v3433_v24 = vpop.f32.mrf.mxu0 }
 0x1ea   :  { %1327 = vmatpush1.msra.mxu1 %v678_v35  ;;  %1398 = vmatpush1.msra.mxu0 %v680_v36  ;;  %v574_v35 = vld [vmem:[%s3847_s4 + $0x3f0] sm:$0xff]  ;;  %v575_v36 = vld [vmem:[%s3847_s4 + $0x3f8] sm:$0xff] }
 0x1eb   :  { %1328 = vmatprep.subr.mxu1 %v673_v39  ;;  %1399 = vmatprep.subr.mxu0 %v675_v40  ;;  %v900_v40 = vunpack.c.l.bf16 %v578_v30  ;;  %v893_v44 = vunpack.c.h.bf16 %v574_v35  ;;  %v895_v45 = vunpack.c.h.bf16 %v575_v36 }
 0x1ec   :  { %1329 = vmatpush1.msra.mxu1 %v672_v41  ;;  %1400 = vmatpush1.msra.mxu0 %v674_v43  ;;  %v571_v41 = vld [vmem:[%s3847_s4 + $0x3d8] sm:$0xff]  ;;  %v572_v43 = vld [vmem:[%s3847_s4 + $0x3e0] sm:$0xff] }
 0x1ed   :  { %1330 = vmatprep.subr.mxu1 %v667_v46  ;;  %1401 = vmatprep.subr.mxu0 %v669_v47  ;;  %v892_v46 = vunpack.c.l.bf16 %v574_v35  ;;  %v894_v47 = vunpack.c.l.bf16 %v575_v36  ;;  %v887_v50 = vunpack.c.h.bf16 %v571_v41  ;;  %v889_v51 = vunpack.c.h.bf16 %v572_v43  ;;  %v545_v35 = vld [vmem:[%s3847_s4 + $0x308] sm:$0xff]  ;;  %v435_v36 = vpop.f32.mrf.mxu0 }
 0x1ee   :  { %1331 = vmatpush1.msra.mxu1 %v666_v48  ;;  %1402 = vmatpush1.msra.mxu0 %v668_v49  ;;  %v568_v48 = vld [vmem:[%s3847_s4 + $0x3c0] sm:$0xff]  ;;  %v569_v49 = vld [vmem:[%s3847_s4 + $0x3c8] sm:$0xff] }
 0x1ef   :  { %1332 = vmatprep.subr.mxu1 %v661_v52  ;;  %1403 = vmatprep.subr.mxu0 %v663_v53  ;;  %v886_v52 = vunpack.c.l.bf16 %v571_v41  ;;  %v888_v53 = vunpack.c.l.bf16 %v572_v43  ;;  %v881_v8 = vunpack.c.h.bf16 %v568_v48  ;;  %v883_v56 = vunpack.c.h.bf16 %v569_v49 }
 0x1f0   :  { %1333 = vmatpush1.msra.mxu1 %v660_v54  ;;  %1404 = vmatpush1.msra.mxu0 %v662_v55  ;;  %v565_v54 = vld [vmem:[%s3847_s4 + $0x3a8] sm:$0xff]  ;;  %v566_v55 = vld [vmem:[%s3847_s4 + $0x3b0] sm:$0xff]  ;;  %v835_v43 = vunpack.c.h.bf16 %v545_v35 }
 0x1f1   :  { %1334 = vmatprep.subr.mxu1 %v655_v57  ;;  %1405 = vmatprep.subr.mxu0 %v657_v58  ;;  %v880_v57 = vunpack.c.l.bf16 %v568_v48  ;;  %v882_v58 = vunpack.c.l.bf16 %v569_v49  ;;  %v875_v61 = vunpack.c.h.bf16 %v565_v54  ;;  %v877_v63 = vunpack.c.h.bf16 %v566_v55  ;;  %v634_v49 = vld [vmem:[%s3847_s4 + $0x5d0] sm:$0xff] }
 0x1f2   :  { %1335 = vmatpush1.msra.mxu1 %v654_v59  ;;  %1406 = vmatpush1.msra.mxu0 %v656_v60  ;;  %v562_v59 = vld [vmem:[%s3847_s4 + $0x390] sm:$0xff]  ;;  %v563_v60 = vld [vmem:[%s3847_s4 + $0x398] sm:$0xff]  ;;  %v834_v48 = vunpack.c.l.bf16 %v545_v35  ;;  %v564_v35 = vld [vmem:[%s3847_s4 + $0x3a0] sm:$0xff] }
 0x1f3   :  { %1336 = vmatprep.subr.mxu1 %v649_v0  ;;  %1407 = vmatprep.subr.mxu0 %v651_v3  ;;  %v874_v0 = vunpack.c.l.bf16 %v565_v54  ;;  %v876_v3 = vunpack.c.l.bf16 %v566_v55  ;;  %v870_v9 = vunpack.c.l.bf16 %v563_v60  ;;  %v585_v55 = vld [vmem:[%s3847_s4 + $0x448] sm:$0xff] }
 0x1f4   :  { %1337 = vmatpush1.msra.mxu1 %v648_v4  ;;  %1408 = vmatpush1.msra.mxu0 %v650_v5  ;;  %v559_v4 = vld [vmem:[%s3847_s4 + $0x378] sm:$0xff]  ;;  %v560_v5 = vld [vmem:[%s3847_s4 + $0x380] sm:$0xff] }
 0x1f5   :  { %1338 = vmatprep.subr.mxu1 %v643_v6  ;;  %1409 = vmatprep.subr.mxu0 %v645_v7  ;;  %v869_v6 = vunpack.c.h.bf16 %v562_v59  ;;  %v871_v7 = vunpack.c.h.bf16 %v563_v60  ;;  %v863_v12 = vunpack.c.h.bf16 %v559_v4  ;;  %v865_v13 = vunpack.c.h.bf16 %v560_v5  ;;  %v582_v60 = vld [vmem:[%s3847_s4 + $0x430] sm:$0xff] }
 0x1f6   :  { %1339 = vmatpush1.msra.mxu1 %v642_v2  ;;  %1372 = vmatprep.mubr.f32.mxu1 %v2761_v1  ;;  %v868_v2 = vunpack.c.l.bf16 %v562_v59  ;;  %v1012_v59 = vunpack.c.l.bf16 %v634_v49 }
 0x1f7   :  { %1410 = vmatpush1.msra.mxu0 %v644_v11  ;;  %1443 = vmatprep.mubr.f32.mxu0 %v2761_v1  ;;  %v557_v11 = vld [vmem:[%s3847_s4 + $0x368] sm:$0xff] }
 0x1f8   :  { %1373 = vmatmul.mubr.f32.vlgmr.msra.gmra.mxu1 %v3255_v42  ;;  %1444 = vmatmul.mubr.f32.vlgmr.msra.gmra.mxu0 %v3255_v42  ;;  %v577_v42 = vld [vmem:[%s3847_s4 + $0x408] sm:$0xff]  ;;  %v859_v19 = vunpack.c.h.bf16 %v557_v11 }
 0x1f9   :  { %1450 = vmatprep.subr.mxu1 %v923_v14  ;;  %1521 = vmatprep.subr.mxu0 %v925_v15  ;;  %v899_v37 = vunpack.c.h.bf16 %v577_v42  ;;  %v898_v39 = vunpack.c.l.bf16 %v577_v42  ;;  %v862_v14 = vunpack.c.l.bf16 %v559_v4  ;;  %v864_v15 = vunpack.c.l.bf16 %v560_v5  ;;  %v548_v42 = vld [vmem:[%s3847_s4 + $0x320] sm:$0xff]  ;;  %v579_v5 = vld [vmem:[%s3847_s4 + $0x418] sm:$0xff] }
 0x1fa   :  { %1451 = vmatpush1.msra.mxu1 %v922_v16  ;;  %1522 = vmatpush1.msra.mxu0 %v924_v17  ;;  %v553_v16 = vld [vmem:[%s3847_s4 + $0x348] sm:$0xff]  ;;  %v554_v17 = vld [vmem:[%s3847_s4 + $0x350] sm:$0xff] }
 0x1fb   :  { %1452 = vmatprep.subr.mxu1 %v917_v20  ;;  %1523 = vmatprep.subr.mxu0 %v919_v21  ;;  %v856_v20 = vunpack.c.l.bf16 %v556_v10  ;;  %v858_v21 = vunpack.c.l.bf16 %v557_v11  ;;  %v851_v25 = vunpack.c.h.bf16 %v553_v16  ;;  %v576_v11 = vld [vmem:[%s3847_s4 + $0x400] sm:$0xff] }
 0x1fc   :  { %1453 = vmatpush1.msra.mxu1 %v916_v22  ;;  %1524 = vmatpush1.msra.mxu0 %v918_v23  ;;  %v550_v22 = vld [vmem:[%s3847_s4 + $0x330] sm:$0xff]  ;;  %v551_v23 = vld [vmem:[%s3847_s4 + $0x338] sm:$0xff] }
 0x1fd   :  { %1454 = vmatprep.subr.mxu1 %v911_v26  ;;  %1525 = vmatprep.subr.mxu0 %v913_v27  ;;  %v853_v26 = vunpack.c.h.bf16 %v554_v17  ;;  %v850_v27 = vunpack.c.l.bf16 %v553_v16  ;;  %v845_v30 = vunpack.c.h.bf16 %v550_v22 }
 0x1fe   :  { %1455 = vmatpush1.msra.mxu1 %v910_v28  ;;  %1526 = vmatpush1.msra.mxu0 %v912_v29  ;;  %v852_v28 = vunpack.c.l.bf16 %v554_v17  ;;  %v547_v29 = vld [vmem:[%s3847_s4 + $0x318] sm:$0xff]  ;;  %v573_v17 = vld [vmem:[%s3847_s4 + $0x3e8] sm:$0xff] }
 0x1ff   :  { %1456 = vmatprep.subr.mxu1 %v905_v31  ;;  %1527 = vmatprep.subr.mxu0 %v907_v32  ;;  %v847_v31 = vunpack.c.h.bf16 %v551_v23  ;;  %v844_v32 = vunpack.c.l.bf16 %v550_v22 }
 0x200   :  { %1457 = vmatpush1.msra.mxu1 %v904_v33  ;;  %1528 = vmatpush1.msra.mxu0 %v906_v34  ;;  %v846_v33 = vunpack.c.l.bf16 %v551_v23  ;;  %v544_v34 = vld [vmem:[%s3847_s4 + $0x300] sm:$0xff]  ;;  %v570_v23 = vld [vmem:[%s3847_s4 + $0x3d0] sm:$0xff] }
 0x201   :  { %1458 = vmatprep.subr.mxu1 %v899_v37  ;;  %1529 = vmatprep.subr.mxu0 %v901_v38  ;;  %v839_v37 = vunpack.c.h.bf16 %v547_v29  ;;  %v841_v38 = vunpack.c.h.bf16 %v548_v42  ;;  %v833_v41 = vunpack.c.h.bf16 %v544_v34 }
 0x202   :  { %1459 = vmatpush1.msra.mxu1 %v898_v39  ;;  %1530 = vmatpush1.msra.mxu0 %v900_v40  ;;  %v838_v39 = vunpack.c.l.bf16 %v547_v29  ;;  %v840_v40 = vunpack.c.l.bf16 %v548_v42  ;;  %v567_v42 = vld [vmem:[%s3847_s4 + $0x3b8] sm:$0xff] }
 0x203   :  { %1460 = vmatprep.subr.mxu1 %v893_v44  ;;  %1531 = vmatprep.subr.mxu0 %v895_v45  ;;  %v436_v44 = vadd.f32 %v3145_v62, %v435_v36  ;;  %v832_v45 = vunpack.c.l.bf16 %v544_v34  ;;  %v588_v62 = vld [vmem:[%s3847_s4 + $0x460] sm:$0xff]  ;;  %v610_v36 = vld [vmem:[%s3847_s4 + $0x510] sm:$0xff] }
 0x204   :  { %1461 = vmatpush1.msra.mxu1 %v892_v46  ;;  %1532 = vmatpush1.msra.mxu0 %v894_v47  ;;  %v591_v46 = vld [vmem:[%s3847_s4 + $0x478] sm:$0xff]  ;;  %v637_v47 = vld [vmem:[%s3847_s4 + $0x5e8] sm:$0xff] }
 0x205   :  { %1462 = vmatprep.subr.mxu1 %v887_v50  ;;  %1533 = vmatprep.subr.mxu0 %v889_v51  ;;  %v927_v50 = vunpack.c.h.bf16 %v591_v46  ;;  %v1019_v51 = vunpack.c.h.bf16 %v637_v47  ;;  %v1018_v54 = vunpack.c.l.bf16 %v637_v47  ;;  %v964_v47 = vunpack.c.l.bf16 %v610_v36 }
 0x206   :  { %1463 = vmatpush1.msra.mxu1 %v886_v52  ;;  %1534 = vmatpush1.msra.mxu0 %v888_v53  ;;  %v3460_v52 = vmax.f32 %v436_v44, 0.0  ;;  %v926_v53 = vunpack.c.l.bf16 %v591_v46  ;;  %v873_v44 = vunpack.c.h.bf16 %v564_v35  ;;  %v872_v46 = vunpack.c.l.bf16 %v564_v35 }
 0x207   :  { %1464 = vmatprep.subr.mxu1 %v881_v8  ;;  %1535 = vmatprep.subr.mxu0 %v883_v56  ;;  %v631_v8 = vld [vmem:[%s3847_s4 + $0x5b8] sm:$0xff]  ;;  %v921_v56 = vunpack.c.h.bf16 %v588_v62 }
 0x208   :  { %1465 = vmatpush1.msra.mxu1 %v880_v57  ;;  %1536 = vmatpush1.msra.mxu0 %v882_v58  ;;  %v1013_v57 = vunpack.c.h.bf16 %v634_v49  ;;  %v920_v58 = vunpack.c.l.bf16 %v588_v62  ;;  %v1006_v4 = vunpack.c.l.bf16 %v631_v8  ;;  %v604_v62 = vld [vmem:[%s3847_s4 + $0x4e0] sm:$0xff] }
 0x209   :  { %1466 = vmatprep.subr.mxu1 %v875_v61  ;;  %1537 = vmatprep.subr.mxu0 %v877_v63  ;;  %v628_v61 = vld [vmem:[%s3847_s4 + $0x5a0] sm:$0xff]  ;;  %v915_v63 = vunpack.c.h.bf16 %v585_v55 }
 0x20a   :  { %1467 = vmatpush1.msra.mxu1 %v874_v0  ;;  %1538 = vmatpush1.msra.mxu0 %v876_v3  ;;  %v1007_v0 = vunpack.c.h.bf16 %v631_v8  ;;  %v914_v3 = vunpack.c.l.bf16 %v585_v55  ;;  %v1000_v10 = vunpack.c.l.bf16 %v628_v61  ;;  %v601_v55 = vld [vmem:[%s3847_s4 + $0x4c8] sm:$0xff] }
 0x20b   :  { %1468 = vmatprep.subr.mxu1 %v869_v6  ;;  %1539 = vmatprep.subr.mxu0 %v871_v7  ;;  %v625_v6 = vld [vmem:[%s3847_s4 + $0x588] sm:$0xff]  ;;  %v909_v7 = vunpack.c.h.bf16 %v582_v60 }
 0x20c   :  { %1469 = vmatpush1.msra.mxu1 %v868_v2  ;;  %1540 = vmatpush1.msra.mxu0 %v870_v9  ;;  %v1001_v2 = vunpack.c.h.bf16 %v628_v61  ;;  %v908_v9 = vunpack.c.l.bf16 %v582_v60  ;;  %v994_v16 = vunpack.c.l.bf16 %v625_v6  ;;  %v598_v60 = vld [vmem:[%s3847_s4 + $0x4b0] sm:$0xff] }
 0x20d   :  { %1470 = vmatprep.subr.mxu1 %v863_v12  ;;  %1541 = vmatprep.subr.mxu0 %v865_v13  ;;  %v622_v12 = vld [vmem:[%s3847_s4 + $0x570] sm:$0xff]  ;;  %v903_v13 = vunpack.c.h.bf16 %v579_v5 }
 0x20e   :  { %1471 = vmatpush1.msra.mxu1 %v862_v14  ;;  %1542 = vmatpush1.msra.mxu0 %v864_v15  ;;  %v995_v14 = vunpack.c.h.bf16 %v625_v6  ;;  %v902_v15 = vunpack.c.l.bf16 %v579_v5  ;;  %v988_v22 = vunpack.c.l.bf16 %v622_v12  ;;  %v595_v5 = vld [vmem:[%s3847_s4 + $0x498] sm:$0xff] }
 0x20f   :  { %1472 = vmatprep.subr.mxu1 %v857_v18  ;;  %1543 = vmatprep.subr.mxu0 %v859_v19  ;;  %v619_v18 = vld [vmem:[%s3847_s4 + $0x558] sm:$0xff]  ;;  %v897_v19 = vunpack.c.h.bf16 %v576_v11 }
 0x210   :  { %1473 = vmatpush1.msra.mxu1 %v856_v20  ;;  %1544 = vmatpush1.msra.mxu0 %v858_v21  ;;  %v989_v20 = vunpack.c.h.bf16 %v622_v12  ;;  %v896_v21 = vunpack.c.l.bf16 %v576_v11  ;;  %v982_v29 = vunpack.c.l.bf16 %v619_v18  ;;  %v592_v11 = vld [vmem:[%s3847_s4 + $0x480] sm:$0xff] }
 0x211   :  { %1474 = vmatprep.subr.mxu1 %v851_v25  ;;  %1545 = vmatprep.subr.mxu0 %v853_v26  ;;  %v616_v25 = vld [vmem:[%s3847_s4 + $0x540] sm:$0xff]  ;;  %v891_v26 = vunpack.c.h.bf16 %v573_v17 }
 0x212   :  { %1475 = vmatpush1.msra.mxu1 %v850_v27  ;;  %1546 = vmatpush1.msra.mxu0 %v852_v28  ;;  %v983_v27 = vunpack.c.h.bf16 %v619_v18  ;;  %v890_v28 = vunpack.c.l.bf16 %v573_v17  ;;  %v976_v34 = vunpack.c.l.bf16 %v616_v25  ;;  %v929_v17 = vunpack.c.h.bf16 %v592_v11  ;;  %v2760_v18 = vld [vmem:[%s3848_s3] ss:$0 sm:$0xff] }
 0x213   :  { %1476 = vmatprep.subr.mxu1 %v845_v30  ;;  %1547 = vmatprep.subr.mxu0 %v847_v31  ;;  %v613_v30 = vld [vmem:[%s3847_s4 + $0x528] sm:$0xff]  ;;  %v885_v31 = vunpack.c.h.bf16 %v570_v23 }
 0x214   :  { %1477 = vmatpush1.msra.mxu1 %v844_v32  ;;  %1548 = vmatpush1.msra.mxu0 %v846_v33  ;;  %v977_v32 = vunpack.c.h.bf16 %v616_v25  ;;  %v884_v33 = vunpack.c.l.bf16 %v570_v23  ;;  %v928_v23 = vunpack.c.l.bf16 %v592_v11  ;;  %v636_v25 = vld [vmem:[%s3847_s4 + $0x5e0] sm:$0xff] }
 0x215   :  { %1478 = vmatprep.subr.mxu1 %v839_v37  ;;  %1549 = vmatprep.subr.mxu0 %v841_v38  ;;  %v879_v37 = vunpack.c.h.bf16 %v567_v42  ;;  %v971_v38 = vunpack.c.h.bf16 %v613_v30  ;;  %v1016_v35 = vunpack.c.l.bf16 %v636_v25  ;;  %v612_v11 = vld [vmem:[%s3847_s4 + $0x520] sm:$0xff] }
 0x216   :  { %1479 = vmatpush1.msra.mxu1 %v838_v39  ;;  %1550 = vmatpush1.msra.mxu0 %v840_v40  ;;  %v878_v39 = vunpack.c.l.bf16 %v567_v42  ;;  %v970_v40 = vunpack.c.l.bf16 %v613_v30  ;;  %v632_v30 = vld [vmem:[%s3847_s4 + $0x5c0] sm:$0xff] }
 0x217   :  { %1480 = vmatprep.subr.mxu1 %v833_v41  ;;  %1551 = vmatprep.subr.mxu0 %v835_v43  ;;  %v561_v41 = vld [vmem:[%s3847_s4 + $0x388] sm:$0xff]  ;;  %v607_v43 = vld [vmem:[%s3847_s4 + $0x4f8] sm:$0xff] }
 0x218   :  { %1481 = vmatpush1.msra.mxu1 %v832_v45  ;;  %1514 = vmatprep.mubr.f32.mxu1 %v2761_v1  ;;  %v965_v45 = vunpack.c.h.bf16 %v610_v36  ;;  %v867_v49 = vunpack.c.h.bf16 %v561_v41  ;;  %v629_v36 = vld [vmem:[%s3847_s4 + $0x5a8] sm:$0xff] }
 0x219   :  { %1552 = vmatpush1.msra.mxu0 %v834_v48  ;;  %1585 = vmatprep.mubr.f32.mxu0 %v2761_v1  ;;  %v558_v48 = vld [vmem:[%s3847_s4 + $0x370] sm:$0xff] }
 0x21a   :  { %1515 = vmatmul.mubr.f32.vlgmr.msra.gmra.mxu1 %v3460_v52  ;;  %1586 = vmatmul.mubr.f32.vlgmr.msra.gmra.mxu0 %v3460_v52  ;;  %v861_v8 = vunpack.c.h.bf16 %v558_v48 }
 0x21b   :  { %1592 = vmatprep.subr.mxu1 %v927_v50  ;;  %1669 = vmatprep.subr.mxu0 %v1019_v51  ;;  %v959_v50 = vunpack.c.h.bf16 %v607_v43  ;;  %v866_v51 = vunpack.c.l.bf16 %v561_v41  ;;  %v626_v41 = vld [vmem:[%s3847_s4 + $0x590] sm:$0xff] }
 0x21c   :  { %1593 = vmatpush1.msra.mxu1 %v926_v53  ;;  %1670 = vmatpush1.msra.mxu0 %v1018_v54  ;;  %v958_v53 = vunpack.c.l.bf16 %v607_v43  ;;  %v555_v54 = vld [vmem:[%s3847_s4 + $0x358] sm:$0xff] }
 0x21d   :  { %1594 = vmatprep.subr.mxu1 %v921_v56  ;;  %1671 = vmatprep.subr.mxu0 %v1013_v57  ;;  %v953_v56 = vunpack.c.h.bf16 %v604_v62  ;;  %v860_v57 = vunpack.c.l.bf16 %v558_v48  ;;  %v855_v61 = vunpack.c.h.bf16 %v555_v54  ;;  %v627_v43 = vld [vmem:[%s3847_s4 + $0x598] sm:$0xff] }
 0x21e   :  { %1595 = vmatpush1.msra.mxu1 %v920_v58  ;;  %1672 = vmatpush1.msra.mxu0 %v1012_v59  ;;  %v952_v58 = vunpack.c.l.bf16 %v604_v62  ;;  %v552_v59 = vld [vmem:[%s3847_s4 + $0x340] sm:$0xff]  ;;  %v623_v48 = vld [vmem:[%s3847_s4 + $0x578] sm:$0xff] }
 0x21f   :  { %1596 = vmatprep.subr.mxu1 %v915_v63  ;;  %1673 = vmatprep.subr.mxu0 %v1007_v0  ;;  %v947_v63 = vunpack.c.h.bf16 %v601_v55  ;;  %v854_v0 = vunpack.c.l.bf16 %v555_v54  ;;  %v849_v6 = vunpack.c.h.bf16 %v552_v59  ;;  %v624_v62 = vld [vmem:[%s3847_s4 + $0x580] sm:$0xff] }
 0x220   :  { %1597 = vmatpush1.msra.mxu1 %v914_v3  ;;  %1674 = vmatpush1.msra.mxu0 %v1006_v4  ;;  %v946_v3 = vunpack.c.l.bf16 %v601_v55  ;;  %v549_v4 = vld [vmem:[%s3847_s4 + $0x328] sm:$0xff]  ;;  %v620_v54 = vld [vmem:[%s3847_s4 + $0x560] sm:$0xff] }
 0x221   :  { %1598 = vmatprep.subr.mxu1 %v909_v7  ;;  %1675 = vmatprep.subr.mxu0 %v1001_v2  ;;  %v941_v7 = vunpack.c.h.bf16 %v598_v60  ;;  %v848_v2 = vunpack.c.l.bf16 %v552_v59  ;;  %v843_v12 = vunpack.c.h.bf16 %v549_v4  ;;  %v621_v55 = vld [vmem:[%s3847_s4 + $0x568] sm:$0xff] }
 0x222   :  { %1599 = vmatpush1.msra.mxu1 %v908_v9  ;;  %1676 = vmatpush1.msra.mxu0 %v1000_v10  ;;  %v940_v9 = vunpack.c.l.bf16 %v598_v60  ;;  %v546_v10 = vld [vmem:[%s3847_s4 + $0x310] sm:$0xff]  ;;  %v617_v59 = vld [vmem:[%s3847_s4 + $0x548] sm:$0xff] }
 0x223   :  { %1600 = vmatprep.subr.mxu1 %v903_v13  ;;  %1677 = vmatprep.subr.mxu0 %v995_v14  ;;  %v935_v13 = vunpack.c.h.bf16 %v595_v5  ;;  %v842_v14 = vunpack.c.l.bf16 %v549_v4  ;;  %v618_v60 = vld [vmem:[%s3847_s4 + $0x550] sm:$0xff] }
 0x224   :  { %1601 = vmatpush1.msra.mxu1 %v902_v15  ;;  %1678 = vmatpush1.msra.mxu0 %v994_v16  ;;  %v934_v15 = vunpack.c.l.bf16 %v595_v5  ;;  %v837_v16 = vunpack.c.h.bf16 %v546_v10  ;;  %v614_v4 = vld [vmem:[%s3847_s4 + $0x530] sm:$0xff]  ;;  %v615_v5 = vld [vmem:[%s3847_s4 + $0x538] sm:$0xff] }
 0x225   :  { %1602 = vmatprep.subr.mxu1 %v897_v19  ;;  %1679 = vmatprep.subr.mxu0 %v989_v20  ;;  %v441_v19 = vadd.f32 %v2760_v18, %v3433_v24  ;;  %v836_v20 = vunpack.c.l.bf16 %v546_v10  ;;  %v635_v24 = vld [vmem:[%s3847_s4 + $0x5d8] sm:$0xff] }
 0x226   :  { %1603 = vmatpush1.msra.mxu1 %v896_v21  ;;  %1680 = vmatpush1.msra.mxu0 %v988_v22  ;;  %v638_v21 = vld [vmem:[%s3847_s4 + $0x5f0] sm:$0xff]  ;;  %v639_v22 = vld [vmem:[%s3847_s4 + $0x5f8] sm:$0xff] }
 0x227   :  { %1604 = vmatprep.subr.mxu1 %v891_v26  ;;  %1681 = vmatprep.subr.mxu0 %v983_v27  ;;  %v1021_v26 = vunpack.c.h.bf16 %v638_v21  ;;  %v1023_v27 = vunpack.c.h.bf16 %v639_v22  ;;  %v1022_v42 = vunpack.c.l.bf16 %v639_v22  ;;  %v611_v10 = vld [vmem:[%s3847_s4 + $0x518] sm:$0xff]  ;;  %v605_v22 = vld [vmem:[%s3847_s4 + $0x4e8] sm:$0xff] }
 0x228   :  { %1605 = vmatpush1.msra.mxu1 %v890_v28  ;;  %1682 = vmatpush1.msra.mxu0 %v982_v29  ;;  %v3566_v28 = vmax.f32 %v441_v19, 0.0  ;;  %v1020_v29 = vunpack.c.l.bf16 %v638_v21  ;;  %v967_v18 = vunpack.c.h.bf16 %v611_v10  ;;  %v969_v19 = vunpack.c.h.bf16 %v612_v11 }
 0x229   :  { %1606 = vmatprep.subr.mxu1 %v885_v31  ;;  %1683 = vmatprep.subr.mxu0 %v977_v32  ;;  %v633_v31 = vld [vmem:[%s3847_s4 + $0x5c8] sm:$0xff]  ;;  %v1015_v32 = vunpack.c.h.bf16 %v635_v24  ;;  %v968_v21 = vunpack.c.l.bf16 %v612_v11 }
 0x22a   :  { %1607 = vmatpush1.msra.mxu1 %v884_v33  ;;  %1684 = vmatpush1.msra.mxu0 %v976_v34  ;;  %v1017_v33 = vunpack.c.h.bf16 %v636_v25  ;;  %v1014_v34 = vunpack.c.l.bf16 %v635_v24 }
 0x22b   :  { %1608 = vmatprep.subr.mxu1 %v879_v37  ;;  %1685 = vmatprep.subr.mxu0 %v971_v38  ;;  %v630_v37 = vld [vmem:[%s3847_s4 + $0x5b0] sm:$0xff]  ;;  %v1009_v38 = vunpack.c.h.bf16 %v632_v30 }
 0x22c   :  { %1609 = vmatpush1.msra.mxu1 %v878_v39  ;;  %1686 = vmatpush1.msra.mxu0 %v970_v40  ;;  %v1011_v39 = vunpack.c.h.bf16 %v633_v31  ;;  %v1008_v40 = vunpack.c.l.bf16 %v632_v30  ;;  %v955_v30 = vunpack.c.h.bf16 %v605_v22 }
 0x22d   :  { %1610 = vmatprep.subr.mxu1 %v873_v44  ;;  %1687 = vmatprep.subr.mxu0 %v965_v45  ;;  %v1003_v44 = vunpack.c.h.bf16 %v629_v36  ;;  %v1005_v45 = vunpack.c.h.bf16 %v630_v37 }
 0x22e   :  { %1611 = vmatpush1.msra.mxu1 %v872_v46  ;;  %1688 = vmatpush1.msra.mxu0 %v964_v47  ;;  %v1002_v46 = vunpack.c.l.bf16 %v629_v36  ;;  %v1004_v47 = vunpack.c.l.bf16 %v630_v37 }
 0x22f   :  { %1612 = vmatprep.subr.mxu1 %v867_v49  ;;  %1689 = vmatprep.subr.mxu0 %v959_v50  ;;  %v997_v49 = vunpack.c.h.bf16 %v626_v41  ;;  %v999_v50 = vunpack.c.h.bf16 %v627_v43 }
 0x230   :  { %1613 = vmatpush1.msra.mxu1 %v866_v51  ;;  %1690 = vmatpush1.msra.mxu0 %v958_v53  ;;  %v996_v51 = vunpack.c.l.bf16 %v626_v41  ;;  %v998_v53 = vunpack.c.l.bf16 %v627_v43 }
 0x231   :  { %1614 = vmatprep.subr.mxu1 %v861_v8  ;;  %1691 = vmatprep.subr.mxu0 %v953_v56  ;;  %v991_v8 = vunpack.c.h.bf16 %v623_v48  ;;  %v993_v56 = vunpack.c.h.bf16 %v624_v62 }
 0x232   :  { %1615 = vmatpush1.msra.mxu1 %v860_v57  ;;  %1692 = vmatpush1.msra.mxu0 %v952_v58  ;;  %v990_v57 = vunpack.c.l.bf16 %v623_v48  ;;  %v992_v58 = vunpack.c.l.bf16 %v624_v62 }
 0x233   :  { %1616 = vmatprep.subr.mxu1 %v855_v61  ;;  %1693 = vmatprep.subr.mxu0 %v947_v63  ;;  %v985_v61 = vunpack.c.h.bf16 %v620_v54  ;;  %v987_v63 = vunpack.c.h.bf16 %v621_v55 }
 0x234   :  { %1617 = vmatpush1.msra.mxu1 %v854_v0  ;;  %1694 = vmatpush1.msra.mxu0 %v946_v3  ;;  %v984_v0 = vunpack.c.l.bf16 %v620_v54  ;;  %v986_v3 = vunpack.c.l.bf16 %v621_v55 }
 0x235   :  { %1618 = vmatprep.subr.mxu1 %v849_v6  ;;  %1695 = vmatprep.subr.mxu0 %v941_v7  ;;  %v979_v6 = vunpack.c.h.bf16 %v617_v59  ;;  %v981_v7 = vunpack.c.h.bf16 %v618_v60 }
 0x236   :  { %1619 = vmatpush1.msra.mxu1 %v848_v2  ;;  %1696 = vmatpush1.msra.mxu0 %v940_v9  ;;  %v978_v2 = vunpack.c.l.bf16 %v617_v59  ;;  %v980_v9 = vunpack.c.l.bf16 %v618_v60 }
 0x237   :  { %1620 = vmatprep.subr.mxu1 %v843_v12  ;;  %1697 = vmatprep.subr.mxu0 %v935_v13  ;;  %v973_v12 = vunpack.c.h.bf16 %v614_v4  ;;  %v975_v13 = vunpack.c.h.bf16 %v615_v5 }
 0x238   :  { %1621 = vmatpush1.msra.mxu1 %v842_v14  ;;  %1698 = vmatpush1.msra.mxu0 %v934_v15  ;;  %v972_v14 = vunpack.c.l.bf16 %v614_v4  ;;  %v974_v15 = vunpack.c.l.bf16 %v615_v5  ;;  %v2533_v4 = vld [vmem:[%s3849_s5 + $0x28] sm:$0xff]  }
 0x239   :  { %1622 = vmatprep.subr.mxu1 %v837_v16  ;;  %1699 = vmatprep.subr.mxu0 %v929_v17  ;;  %v608_v16 = vld [vmem:[%s3847_s4 + $0x500] sm:$0xff]  ;;  %v609_v17 = vld [vmem:[%s3847_s4 + $0x508] sm:$0xff]  ;;  %v2356_v11 = vunpack.c.l.bf16 %v2533_v4 }
 0x23a   :  { %1623 = vmatpush1.msra.mxu1 %v836_v20  ;;  %1656 = vmatprep.mubr.f32.mxu1 %v2761_v1  ;;  %v966_v20 = vunpack.c.l.bf16 %v611_v10  ;;  %v961_v24 = vunpack.c.h.bf16 %v608_v16  ;;  %v963_v25 = vunpack.c.h.bf16 %v609_v17  ;;  %v2532_v10 = vld [vmem:[%s3849_s5 + $0x20] sm:$0xff]  }
 0x23b   :  { %1700 = vmatpush1.msra.mxu0 %v928_v23  ;;  %1733 = vmatprep.mubr.f32.mxu0 %v2761_v1  ;;  %v606_v23 = vld [vmem:[%s3847_s4 + $0x4f0] sm:$0xff] }
 0x23c   :  { %1657 = vmatmul.mubr.f32.vlgmr.msra.gmra.mxu1 %v3460_v52  ;;  %1734 = vmatmul.mubr.f32.vlgmr.msra.gmra.mxu0 %v3566_v28  ;;  %v1010_v52 = vunpack.c.l.bf16 %v633_v31  ;;  %v957_v31 = vunpack.c.h.bf16 %v606_v23 }
 0x23d   :  { %1740 = vmatprep.subr.mxu1 %v1021_v26  ;;  %1811 = vmatprep.subr.mxu0 %v1023_v27  ;;  %v960_v26 = vunpack.c.l.bf16 %v608_v16  ;;  %v962_v27 = vunpack.c.l.bf16 %v609_v17  ;;  %v2531_v16 = vld [vmem:[%s3849_s5 + $0x18] sm:$0xff]   ;;  %v2352_v17 = vunpack.c.l.bf16 %v2532_v10 }
 0x23e   :  { %1741 = vmatpush1.msra.mxu1 %v1020_v29  ;;  %1812 = vmatpush1.msra.mxu0 %v1022_v42  ;;  %v602_v29 = vld [vmem:[%s3847_s4 + $0x4d0] sm:$0xff]  ;;  %v603_v42 = vld [vmem:[%s3847_s4 + $0x4d8] sm:$0xff] }
 0x23f   :  { %1742 = vmatprep.subr.mxu1 %v1015_v32  ;;  %1813 = vmatprep.subr.mxu0 %v1017_v33  ;;  %v954_v32 = vunpack.c.l.bf16 %v605_v22  ;;  %v956_v33 = vunpack.c.l.bf16 %v606_v23  ;;  %v949_v36 = vunpack.c.h.bf16 %v602_v29  ;;  %v951_v37 = vunpack.c.h.bf16 %v603_v42  ;;  %v2530_v22 = vld [vmem:[%s3849_s5 + $0x10] sm:$0xff]  }
 0x240   :  { %1743 = vmatpush1.msra.mxu1 %v1014_v34  ;;  %1814 = vmatpush1.msra.mxu0 %v1016_v35  ;;  %v599_v34 = vld [vmem:[%s3847_s4 + $0x4b8] sm:$0xff]  ;;  %v600_v35 = vld [vmem:[%s3847_s4 + $0x4c0] sm:$0xff]  ;;  %v2348_v23 = vunpack.c.l.bf16 %v2531_v16 }
 0x241   :  { %1744 = vmatprep.subr.mxu1 %v1009_v38  ;;  %1815 = vmatprep.subr.mxu0 %v1011_v39  ;;  %v948_v38 = vunpack.c.l.bf16 %v602_v29  ;;  %v950_v39 = vunpack.c.l.bf16 %v603_v42  ;;  %v943_v41 = vunpack.c.h.bf16 %v599_v34  ;;  %v945_v43 = vunpack.c.h.bf16 %v600_v35  ;;  %v2537_v29 = vld [vmem:[%s3849_s5 + $0x48] sm:$0xff]  }
 0x242   :  { %1745 = vmatpush1.msra.mxu1 %v1008_v40  ;;  %1816 = vmatpush1.msra.mxu0 %v1010_v52  ;;  %v596_v40 = vld [vmem:[%s3847_s4 + $0x4a0] sm:$0xff]  ;;  %v597_v52 = vld [vmem:[%s3847_s4 + $0x4a8] sm:$0xff]  ;;  %v2373_v42 = vunpack.c.h.bf16 %v2537_v29 }
 0x243   :  { %1746 = vmatprep.subr.mxu1 %v1003_v44  ;;  %1817 = vmatprep.subr.mxu0 %v1005_v45  ;;  %v942_v44 = vunpack.c.l.bf16 %v599_v34  ;;  %v944_v45 = vunpack.c.l.bf16 %v600_v35  ;;  %v937_v48 = vunpack.c.h.bf16 %v596_v40  ;;  %v939_v62 = vunpack.c.h.bf16 %v597_v52  ;;  %v2536_v34 = vld [vmem:[%s3849_s5 + $0x40] sm:$0xff]  }
 0x244   :  { %1747 = vmatpush1.msra.mxu1 %v1002_v46  ;;  %1818 = vmatpush1.msra.mxu0 %v1004_v47  ;;  %v593_v46 = vld [vmem:[%s3847_s4 + $0x488] sm:$0xff]  ;;  %v594_v47 = vld [vmem:[%s3847_s4 + $0x490] sm:$0xff]  ;;  %v2369_v35 = vunpack.c.h.bf16 %v2536_v34 }
 0x245   :  { %1748 = vmatprep.subr.mxu1 %v997_v49  ;;  %1819 = vmatprep.subr.mxu0 %v999_v50  ;;  %v936_v49 = vunpack.c.l.bf16 %v596_v40  ;;  %v938_v50 = vunpack.c.l.bf16 %v597_v52  ;;  %v930_v54 = vunpack.c.l.bf16 %v593_v46  ;;  %v932_v55 = vunpack.c.l.bf16 %v594_v47  ;;  %v2559_v40 = vld [vmem:[%s3849_s5 + $0xf8] sm:$0xff]  }
 0x246   :  { %1749 = vmatpush1.msra.mxu1 %v996_v51  ;;  %1820 = vmatpush1.msra.mxu0 %v998_v53  ;;  %v931_v51 = vunpack.c.h.bf16 %v593_v46  ;;  %v933_v53 = vunpack.c.h.bf16 %v594_v47  ;;  %v3714_v52 = vld [vmem:[%s3849_s5 + $0x178] sm:$0xff]   ;;  %v2460_v46 = vunpack.c.l.bf16 %v2559_v40 }
 0x247   :  { %1750 = vmatprep.subr.mxu1 %v991_v8  ;;  %1821 = vmatprep.subr.mxu0 %v993_v56  ;;  %v2543_v8 = vld [vmem:[%s3849_s5 + $0x78] sm:$0xff]  }
 0x248   :  { %1751 = vmatpush1.msra.mxu1 %v990_v57  ;;  %1822 = vmatpush1.msra.mxu0 %v992_v58  ;;  %v2535_v56 = vld [vmem:[%s3849_s5 + $0x38] sm:$0xff]   ;;  %v2542_v57 = vld [vmem:[%s3849_s5 + $0x70] sm:$0xff]   ;;  %v2397_v58 = vunpack.c.h.bf16 %v2543_v8  ;;  %v2396_v60 = vunpack.c.l.bf16 %v2543_v8  ;;  %v2549_v8 = vld [vmem:[%s3849_s5 + $0xa8] sm:$0xff]  }
 0x249   :  { %1752 = vmatprep.subr.mxu1 %v985_v61  ;;  %1823 = vmatprep.subr.mxu0 %v987_v63  ;;  %v2365_v59 = vunpack.c.h.bf16 %v2535_v56  ;;  %v2393_v61 = vunpack.c.h.bf16 %v2542_v57 }
 0x24a   :  { %1753 = vmatpush1.msra.mxu1 %v984_v0  ;;  %1824 = vmatpush1.msra.mxu0 %v986_v3  ;;  %v2541_v0 = vld [vmem:[%s3849_s5 + $0x68] sm:$0xff]   ;;  %v2392_v3 = vunpack.c.l.bf16 %v2542_v57 }
 0x24b   :  { %1754 = vmatprep.subr.mxu1 %v979_v6  ;;  %1825 = vmatprep.subr.mxu0 %v981_v7  ;;  %v2389_v6 = vunpack.c.h.bf16 %v2541_v0  ;;  %v2357_v7 = vunpack.c.h.bf16 %v2533_v4  ;;  %v2547_v4 = vld [vmem:[%s3849_s5 + $0x98] sm:$0xff]  }
 0x24c   :  { %1755 = vmatpush1.msra.mxu1 %v978_v2  ;;  %1826 = vmatpush1.msra.mxu0 %v980_v9  ;;  %v2540_v2 = vld [vmem:[%s3849_s5 + $0x60] sm:$0xff]   ;;  %v2388_v9 = vunpack.c.l.bf16 %v2541_v0  ;;  %v2555_v0 = vld [vmem:[%s3849_s5 + $0xd8] sm:$0xff]  }
 0x24d   :  { %1756 = vmatprep.subr.mxu1 %v973_v12  ;;  %1827 = vmatprep.subr.mxu0 %v975_v13  ;;  %v2385_v12 = vunpack.c.h.bf16 %v2540_v2  ;;  %v2353_v13 = vunpack.c.h.bf16 %v2532_v10  ;;  %v2546_v10 = vld [vmem:[%s3849_s5 + $0x90] sm:$0xff]  }
 0x24e   :  { %1757 = vmatpush1.msra.mxu1 %v972_v14  ;;  %1828 = vmatpush1.msra.mxu0 %v974_v15  ;;  %v2539_v14 = vld [vmem:[%s3849_s5 + $0x58] sm:$0xff]   ;;  %v2384_v15 = vunpack.c.l.bf16 %v2540_v2  ;;  %v2554_v2 = vld [vmem:[%s3849_s5 + $0xd0] sm:$0xff]  }
 0x24f   :  { %1758 = vmatprep.subr.mxu1 %v967_v18  ;;  %1829 = vmatprep.subr.mxu0 %v969_v19  ;;  %v2381_v18 = vunpack.c.h.bf16 %v2539_v14  ;;  %v2349_v19 = vunpack.c.h.bf16 %v2531_v16  ;;  %v2545_v16 = vld [vmem:[%s3849_s5 + $0x88] sm:$0xff]  }
 0x250   :  { %1759 = vmatpush1.msra.mxu1 %v966_v20  ;;  %1830 = vmatpush1.msra.mxu0 %v968_v21  ;;  %v2538_v20 = vld [vmem:[%s3849_s5 + $0x50] sm:$0xff]   ;;  %v2380_v21 = vunpack.c.l.bf16 %v2539_v14  ;;  %v2553_v14 = vld [vmem:[%s3849_s5 + $0xc8] sm:$0xff]  }
 0x251   :  { %1760 = vmatprep.subr.mxu1 %v961_v24  ;;  %1831 = vmatprep.subr.mxu0 %v963_v25  ;;  %v2377_v24 = vunpack.c.h.bf16 %v2538_v20  ;;  %v2345_v25 = vunpack.c.h.bf16 %v2530_v22 }
 0x252   :  { %1761 = vmatpush1.msra.mxu1 %v960_v26  ;;  %1832 = vmatpush1.msra.mxu0 %v962_v27  ;;  %v2376_v26 = vunpack.c.l.bf16 %v2538_v20  ;;  %v2344_v27 = vunpack.c.l.bf16 %v2530_v22  ;;  %v2552_v20 = vld [vmem:[%s3849_s5 + $0xc0] sm:$0xff]  }
 0x253   :  { %1762 = vmatprep.subr.mxu1 %v955_v30  ;;  %1833 = vmatprep.subr.mxu0 %v957_v31  ;;  %v2529_v30 = vld [vmem:[%s3849_s5 + $0x8] sm:$0xff]   ;;  %v2544_v22 = vld [vmem:[%s3849_s5 + $0x80] sm:$0xff]  }
 0x254   :  { %1763 = vmatpush1.msra.mxu1 %v954_v32  ;;  %1834 = vmatpush1.msra.mxu0 %v956_v33  ;;  %v2341_v31 = vunpack.c.h.bf16 %v2529_v30  ;;  %v2372_v32 = vunpack.c.l.bf16 %v2537_v29  ;;  %v2340_v33 = vunpack.c.l.bf16 %v2529_v30 }
 0x255   :  { %1764 = vmatprep.subr.mxu1 %v949_v36  ;;  %1835 = vmatprep.subr.mxu0 %v951_v37  ;;  %v2335_v36 = vld [vmem:[%s3849_s5] sm:$0xff]  }
 0x256   :  { %1765 = vmatpush1.msra.mxu1 %v948_v38  ;;  %1836 = vmatpush1.msra.mxu0 %v950_v39  ;;  %v2337_v37 = vunpack.c.h.bf16 %v2335_v36  ;;  %v2368_v38 = vunpack.c.l.bf16 %v2536_v34  ;;  %v2336_v39 = vunpack.c.l.bf16 %v2335_v36 }
 0x257   :  { %1766 = vmatprep.subr.mxu1 %v943_v41  ;;  %1837 = vmatprep.subr.mxu0 %v945_v43  ;;  %v2461_v41 = vunpack.c.h.bf16 %v2559_v40  ;;  %v2525_v43 = vunpack.c.h.bf16 %v3714_v52 }
 0x258   :  { %1767 = vmatpush1.msra.mxu1 %v942_v44  ;;  %1838 = vmatpush1.msra.mxu0 %v944_v45  ;;  %v2551_v44 = vld [vmem:[%s3849_s5 + $0xb8] sm:$0xff]  }
 0x259   :  { %1768 = vmatprep.subr.mxu1 %v937_v48  ;;  %1839 = vmatprep.subr.mxu0 %v939_v62  ;;  %v2429_v45 = vunpack.c.h.bf16 %v2551_v44  ;;  %v2428_v47 = vunpack.c.l.bf16 %v2551_v44  ;;  %v2558_v48 = vld [vmem:[%s3849_s5 + $0xf0] sm:$0xff]  }
 0x25a   :  { %1769 = vmatpush1.msra.mxu1 %v936_v49  ;;  %1840 = vmatpush1.msra.mxu0 %v938_v50  ;;  %v2457_v62 = vunpack.c.h.bf16 %v2558_v48  ;;  %v2550_v49 = vld [vmem:[%s3849_s5 + $0xb0] sm:$0xff]  }
 0x25b   :  { %1770 = vmatprep.subr.mxu1 %v931_v51  ;;  %1841 = vmatprep.subr.mxu0 %v933_v53  ;;  %v2425_v50 = vunpack.c.h.bf16 %v2550_v49  ;;  %v2456_v51 = vunpack.c.l.bf16 %v2558_v48  ;;  %v2424_v53 = vunpack.c.l.bf16 %v2550_v49  ;;  %v2567_v49 = vld [vmem:[%s3849_s5 + $0x138] sm:$0xff]  }
 0x25c   :  { %1771 = vmatpush1.msra.mxu1 %v930_v54  ;;  %1804 = vmatprep.mubr.f32.mxu1 %v2761_v1  ;;  %v2557_v54 = vld [vmem:[%s3849_s5 + $0xe8] sm:$0xff]  }
 0x25d   :  { %1842 = vmatpush1.msra.mxu0 %v932_v55  ;;  %1875 = vmatprep.mubr.f32.mxu0 %v2761_v1  ;;  %v2534_v1 = vld [vmem:[%s3849_s5 + $0x30] sm:$0xff]   ;;  %v2453_v55 = vunpack.c.h.bf16 %v2557_v54  ;;  %v2452_v57 = vunpack.c.l.bf16 %v2557_v54 }
 0x25e   :  { %1805 = vmatmul.mubr.f32.vlgmr.msra.gmra.mxu1 %v3566_v28  ;;  %1876 = vmatmul.mubr.f32.vlgmr.msra.gmra.mxu0 %v3566_v28  ;;  %v2364_v28 = vunpack.c.l.bf16 %v2535_v56  ;;  %v2361_v63 = vunpack.c.h.bf16 %v2534_v1  ;;  %v2360_v5 = vunpack.c.l.bf16 %v2534_v1  ;;  %v2421_v56 = vunpack.c.h.bf16 %v2549_v8  ;;  %v2548_v1 = vld [vmem:[%s3849_s5 + $0xa0] sm:$0xff]   ;;  %v2574_v54 = vld [vmem:[%s3849_s5 + $0x170] sm:$0xff]  }
 0x25f   :  { %2632 = vmatprep.subr.mxu1 %v2397_v58  ;;  %2667 = vmatprep.subr.mxu0 %v2461_v41  ;;  %v2420_v58 = vunpack.c.l.bf16 %v2549_v8  ;;  %v2524_v8 = vunpack.c.l.bf16 %v3714_v52  ;;  %v2565_v52 = vld [vmem:[%s3849_s5 + $0x128] sm:$0xff]  }
 0x260   :  { %2633 = vmatpush3.msra.mxu1 %v2365_v59  ;;  %2668 = vmatpush3.msra.mxu0 %v2429_v45  ;;  %v2556_v59 = vld [vmem:[%s3849_s5 + $0xe0] sm:$0xff]  }
 0x261   :  { %2634 = vmatprep.subr.mxu1 %v2396_v60  ;;  %2669 = vmatprep.subr.mxu0 %v2460_v46  ;;  %v2449_v60 = vunpack.c.h.bf16 %v2556_v59 }
 0x262   :  { %2635 = vmatpush3.msra.mxu1 %v2364_v28  ;;  %2670 = vmatpush3.msra.mxu0 %v2428_v47  ;;  %v2417_v28 = vunpack.c.h.bf16 %v2548_v1 }
 0x263   :  { %2636 = vmatprep.subr.mxu1 %v2393_v61  ;;  %2671 = vmatprep.subr.mxu0 %v2457_v62  ;;  %v2448_v61 = vunpack.c.l.bf16 %v2556_v59 }
 0x264   :  { %2637 = vmatpush3.msra.mxu1 %v2361_v63  ;;  %2672 = vmatpush3.msra.mxu0 %v2425_v50  ;;  %v2416_v63 = vunpack.c.l.bf16 %v2548_v1  ;;  %v2520_v1 = vunpack.c.l.bf16 %v2574_v54 }
 0x265   :  { %2638 = vmatprep.subr.mxu1 %v2392_v3  ;;  %2673 = vmatprep.subr.mxu0 %v2456_v51  ;;  %v2445_v3 = vunpack.c.h.bf16 %v2555_v0 }
 0x266   :  { %2639 = vmatpush3.msra.mxu1 %v2360_v5  ;;  %2674 = vmatpush3.msra.mxu0 %v2424_v53  ;;  %v2413_v5 = vunpack.c.h.bf16 %v2547_v4  ;;  %v2493_v53 = vunpack.c.h.bf16 %v2567_v49 }
 0x267   :  { %2640 = vmatprep.subr.mxu1 %v2389_v6  ;;  %2675 = vmatprep.subr.mxu0 %v2453_v55  ;;  %v2444_v6 = vunpack.c.l.bf16 %v2555_v0  ;;  %v2572_v0 = vld [vmem:[%s3849_s5 + $0x160] sm:$0xff]  }
 0x268   :  { %2641 = vmatpush3.msra.mxu1 %v2357_v7  ;;  %2676 = vmatpush3.msra.mxu0 %v2421_v56  ;;  %v2412_v7 = vunpack.c.l.bf16 %v2547_v4  ;;  %v2566_v56 = vld [vmem:[%s3849_s5 + $0x130] sm:$0xff]   ;;  %v2564_v4 = vld [vmem:[%s3849_s5 + $0x120] sm:$0xff]  }
 0x269   :  { %2642 = vmatprep.subr.mxu1 %v2388_v9  ;;  %2677 = vmatprep.subr.mxu0 %v2452_v57  ;;  %v2441_v9 = vunpack.c.h.bf16 %v2554_v2  ;;  %v2492_v57 = vunpack.c.l.bf16 %v2567_v49  ;;  %v2489_v59 = vunpack.c.h.bf16 %v2566_v56 }
 0x26a   :  { %2643 = vmatpush3.msra.mxu1 %v2356_v11  ;;  %2678 = vmatpush3.msra.mxu0 %v2420_v58  ;;  %v2409_v11 = vunpack.c.h.bf16 %v2546_v10  ;;  %v2521_v58 = vunpack.c.h.bf16 %v2574_v54 }
 0x26b   :  { %2644 = vmatprep.subr.mxu1 %v2385_v12  ;;  %2679 = vmatprep.subr.mxu0 %v2449_v60  ;;  %v2440_v12 = vunpack.c.l.bf16 %v2554_v2  ;;  %v2573_v60 = vld [vmem:[%s3849_s5 + $0x168] sm:$0xff]   ;;  %v2571_v2 = vld [vmem:[%s3849_s5 + $0x158] sm:$0xff]  }
 0x26c   :  { %2645 = vmatpush3.msra.mxu1 %v2353_v13  ;;  %2680 = vmatpush3.msra.mxu0 %v2417_v28  ;;  %v2408_v13 = vunpack.c.l.bf16 %v2546_v10  ;;  %v2488_v28 = vunpack.c.l.bf16 %v2566_v56  ;;  %v2563_v10 = vld [vmem:[%s3849_s5 + $0x118] sm:$0xff]  }
 0x26d   :  { %2646 = vmatprep.subr.mxu1 %v2384_v15  ;;  %2681 = vmatprep.subr.mxu0 %v2448_v61  ;;  %v2437_v15 = vunpack.c.h.bf16 %v2553_v14  ;;  %v2517_v61 = vunpack.c.h.bf16 %v2573_v60 }
 0x26e   :  { %2647 = vmatpush3.msra.mxu1 %v2352_v17  ;;  %2682 = vmatpush3.msra.mxu0 %v2416_v63  ;;  %v2405_v17 = vunpack.c.h.bf16 %v2545_v16  ;;  %v2485_v63 = vunpack.c.h.bf16 %v2565_v52 }
 0x26f   :  { %2648 = vmatprep.subr.mxu1 %v2381_v18  ;;  %2683 = vmatprep.subr.mxu0 %v2445_v3  ;;  %v2436_v18 = vunpack.c.l.bf16 %v2553_v14  ;;  %v2516_v3 = vunpack.c.l.bf16 %v2573_v60  ;;  %v2570_v14 = vld [vmem:[%s3849_s5 + $0x150] sm:$0xff]  }
 0x270   :  { %2649 = vmatpush3.msra.mxu1 %v2349_v19  ;;  %2684 = vmatpush3.msra.mxu0 %v2413_v5  ;;  %v2404_v19 = vunpack.c.l.bf16 %v2545_v16  ;;  %v2484_v5 = vunpack.c.l.bf16 %v2565_v52  ;;  %v2562_v16 = vld [vmem:[%s3849_s5 + $0x110] sm:$0xff]  }
 0x271   :  { %2650 = vmatprep.subr.mxu1 %v2380_v21  ;;  %2685 = vmatprep.subr.mxu0 %v2444_v6  ;;  %v2433_v21 = vunpack.c.h.bf16 %v2552_v20  ;;  %v2513_v6 = vunpack.c.h.bf16 %v2572_v0 }
 0x272   :  { %2651 = vmatpush3.msra.mxu1 %v2348_v23  ;;  %2686 = vmatpush3.msra.mxu0 %v2412_v7  ;;  %v2401_v23 = vunpack.c.h.bf16 %v2544_v22  ;;  %v2481_v7 = vunpack.c.h.bf16 %v2564_v4 }
 0x273   :  { %2652 = vmatprep.subr.mxu1 %v2377_v24  ;;  %2687 = vmatprep.subr.mxu0 %v2441_v9  ;;  %v2432_v24 = vunpack.c.l.bf16 %v2552_v20  ;;  %v2512_v9 = vunpack.c.l.bf16 %v2572_v0  ;;  %v2569_v20 = vld [vmem:[%s3849_s5 + $0x148] sm:$0xff]  }
 0x274   :  { %2653 = vmatpush3.msra.mxu1 %v2345_v25  ;;  %2688 = vmatpush3.msra.mxu0 %v2409_v11  ;;  %v2400_v25 = vunpack.c.l.bf16 %v2544_v22  ;;  %v2480_v11 = vunpack.c.l.bf16 %v2564_v4  ;;  %v2561_v22 = vld [vmem:[%s3849_s5 + $0x108] sm:$0xff]  }
 0x275   :  { %2654 = vmatprep.subr.mxu1 %v2376_v26  ;;  %2689 = vmatprep.subr.mxu0 %v2440_v12  ;;  %v1090_v26 = vpop.f32.mrf.mxu1  ;;  %v2509_v12 = vunpack.c.h.bf16 %v2571_v2 }
 0x276   :  { %2655 = vmatpush3.msra.mxu1 %v2344_v27  ;;  %2690 = vmatpush3.msra.mxu0 %v2408_v13  ;;  %v3762_v27 = vpop.f32.mrf.mxu0  ;;  %v2477_v13 = vunpack.c.h.bf16 %v2563_v10 }
 0x277   :  { %2656 = vmatprep.subr.mxu1 %v2373_v42  ;;  %2691 = vmatprep.subr.mxu0 %v2437_v15  ;;  %v1092_v29 = vpop.f32.mrf.mxu1  ;;  %v2508_v15 = vunpack.c.l.bf16 %v2571_v2 }
 0x278   :  { %2657 = vmatpush3.msra.mxu1 %v2341_v31  ;;  %2692 = vmatpush3.msra.mxu0 %v2405_v17  ;;  %v3764_v42 = vpop.f32.mrf.mxu0  ;;  %v2476_v17 = vunpack.c.l.bf16 %v2563_v10 }
 0x279   :  { %2658 = vmatprep.subr.mxu1 %v2372_v32  ;;  %2693 = vmatprep.subr.mxu0 %v2436_v18  ;;  %v2505_v18 = vunpack.c.h.bf16 %v2570_v14 }
 0x27a   :  { %2659 = vmatpush3.msra.mxu1 %v2340_v33  ;;  %2694 = vmatpush3.msra.mxu0 %v2404_v19  ;;  %v2473_v19 = vunpack.c.h.bf16 %v2562_v16 }
 0x27b   :  { %2660 = vmatprep.subr.mxu1 %v2369_v35  ;;  %2695 = vmatprep.subr.mxu0 %v2433_v21  ;;  %v2504_v21 = vunpack.c.l.bf16 %v2570_v14 }
 0x27c   :  { %2661 = vmatpush3.msra.mxu1 %v2337_v37  ;;  %2696 = vmatpush3.msra.mxu0 %v2401_v23  ;;  %v2472_v23 = vunpack.c.l.bf16 %v2562_v16 }
 0x27d   :  { %2662 = vmatprep.subr.mxu1 %v2368_v38  ;;  %2697 = vmatprep.subr.mxu0 %v2432_v24 }
 0x27e   :  { %2663 = vmatpush3.msra.mxu1 %v2336_v39  ;;  %2698 = vmatpush3.msra.mxu0 %v2400_v25  ;;  %v2501_v25 = vunpack.c.h.bf16 %v2569_v20 }
 0x27f   :  { %2702 = vmatprep.subr.mxu1 %v2525_v43 }
 0x296   :  { %v3766_v30 = vpop.f32.mrf.mxu1  ;;  %v1303_v31 = vpop.f32.mrf.mxu0 }
 0x297   :  { %v1304_v40 = vadd.f32 %v1303_v31, %v1090_v26  ;;  %v2469_v26 = vunpack.c.h.bf16 %v2561_v22  ;;  %v2500_v31 = vunpack.c.l.bf16 %v2569_v20 }
 0x298   :  { %v3768_v32 = vpop.f32.mrf.mxu1  ;;  %v1305_v33 = vpop.f32.mrf.mxu0 }
 0x299   :  { %v1306_v44 = vadd.f32 %v1305_v33, %v1092_v29  ;;  %v2568_v29 = vld [vmem:[%s3849_s5 + $0x140] sm:$0xff]  }
 0x29a   :  { %v2560_v33 = vld [vmem:[%s3849_s5 + $0x100] sm:$0xff]  }
 0x2b8   :  { %v3770_v34 = vpop.f32.mrf.mxu1  ;;  %v3772_v35 = vpop.f32.mrf.mxu0 }
 0x2ba   :  { %v3774_v36 = vpop.f32.mrf.mxu1  ;;  %v3776_v37 = vpop.f32.mrf.mxu0 }
 0x2da   :  { %v1516_v38 = vpop.f32.mrf.mxu1  ;;  %v3778_v39 = vpop.f32.mrf.mxu0 }
 0x2db   :  { %v1663_v45 = vadd.f32 %v1516_v38, %v1304_v40  ;;  %v2468_v38 = vunpack.c.l.bf16 %v2561_v22  ;;  %v1375_v40 = vadd.f32 %v3770_v34, %v3762_v27  ;;  %v2496_v27 = vunpack.c.l.bf16 %v2568_v29 }
 0x2dc   :  { %v1518_v41 = vpop.f32.mrf.mxu1  ;;  %v3780_v43 = vpop.f32.mrf.mxu0 }
 0x2dd   :  { %v1664_v47 = vadd.f32 %v1518_v41, %v1306_v44  ;;  %v1446_v41 = vadd.f32 %v3772_v35, %v3766_v30  ;;  %v2464_v35 = vunpack.c.l.bf16 %v2560_v33 }
 0x2fc   :  { %v1735_v46 = vpop.f32.mrf.mxu0  ;;  %v1658_v24 = vpop.f32.mrf.mxu1 }
 0x2fd   :  { %v1882_v48 = vadd.f32 %v1735_v46, %v1663_v45  ;;  %v2497_v45 = vunpack.c.h.bf16 %v2568_v29  ;;  %v1377_v46 = vadd.f32 %v3774_v36, %v3764_v42  ;;  %v1667_v49 = vadd.f32 %v1658_v24, %v1446_v41 }
 0x2fe   :  { %v1737_v62 = vpop.f32.mrf.mxu0  ;;  %v1660_v44 = vpop.f32.mrf.mxu1 }
 0x2ff   :  { %v1883_v50 = vadd.f32 %v1737_v62, %v1664_v47  ;;  %v1888_v55 = vmax.f32 %v1882_v48, 0.0  ;;  %v1448_v47 = vadd.f32 %v3776_v37, %v3768_v32  ;;  %v2465_v48 = vunpack.c.h.bf16 %v2560_v33 }
 0x300   :  { %v1665_v62 = vadd.f32 %v3778_v39, %v1375_v40  ;;  %v1666_v30 = vadd.f32 %v3780_v43, %v1377_v46 }
 0x301   :  { %v1889_v51 = vmax.f32 %v1883_v50, 0.0  ;;  %v1668_v34 = vadd.f32 %v1660_v44, %v1448_v47 }
 0x303   :  { %2157 = vmatprep.mubr.f32.mxu1 %v1889_v51 }
 0x304   :  { %2158 = vmatmul.mubr.f32.vlgmr.msra.gmra.mxu1 %v1888_v55 }
 0x305   :  { %2703 = vmatpush3.msra.mxu1 %v2493_v53 }
 0x306   :  { %2704 = vmatprep.subr.mxu1 %v2524_v8 }
 0x307   :  { %2705 = vmatpush3.msra.mxu1 %v2492_v57 }
 0x308   :  { %2706 = vmatprep.subr.mxu1 %v2521_v58 }
 0x309   :  { %2707 = vmatpush3.msra.mxu1 %v2489_v59  ;;  %v2317_v59 = vld [vmem:[%s3850_s6] ss:$0 sm:$0xff] }
 0x30a   :  { %2708 = vmatprep.subr.mxu1 %v2520_v1 }
 0x30b   :  { %2709 = vmatpush3.msra.mxu1 %v2488_v28 }
 0x30c   :  { %2710 = vmatprep.subr.mxu1 %v2517_v61 }
 0x30d   :  { %2711 = vmatpush3.msra.mxu1 %v2485_v63 }
 0x30e   :  { %2712 = vmatprep.subr.mxu1 %v2516_v3 }
 0x30f   :  { %2713 = vmatpush3.msra.mxu1 %v2484_v5 }
 0x310   :  { %2714 = vmatprep.subr.mxu1 %v2513_v6 }
 0x311   :  { %2715 = vmatpush3.msra.mxu1 %v2481_v7 }
 0x312   :  { %2716 = vmatprep.subr.mxu1 %v2512_v9 }
 0x313   :  { %2717 = vmatpush3.msra.mxu1 %v2480_v11 }
 0x314   :  { %2718 = vmatprep.subr.mxu1 %v2509_v12 }
 0x315   :  { %2719 = vmatpush3.msra.mxu1 %v2477_v13 }
 0x316   :  { %2720 = vmatprep.subr.mxu1 %v2508_v15 }
 0x317   :  { %2721 = vmatpush3.msra.mxu1 %v2476_v17 }
 0x318   :  { %2722 = vmatprep.subr.mxu1 %v2505_v18 }
 0x319   :  { %2723 = vmatpush3.msra.mxu1 %v2473_v19 }
 0x31a   :  { %2724 = vmatprep.subr.mxu1 %v2504_v21 }
 0x31b   :  { %2725 = vmatpush3.msra.mxu1 %v2472_v23 }
 0x31c   :  { %2726 = vmatprep.subr.mxu1 %v2501_v25 }
 0x31d   :  { %2727 = vmatpush3.msra.mxu1 %v2469_v26 }
 0x31e   :  { %v1806_v50 = vpop.f32.mrf.mxu1  ;;  %v1877_v51 = vpop.f32.mrf.mxu0  ;;  %2728 = vmatprep.subr.mxu1 %v2500_v31 }
 0x31f   :  { %2729 = vmatpush3.msra.mxu1 %v2468_v38  ;;  %v1884_v53 = vadd.f32 %v1806_v50, %v1665_v62  ;;  %v1886_v54 = vadd.f32 %v1877_v51, %v1667_v49 }
 0x320   :  { %v1808_v42 = vpop.f32.mrf.mxu1  ;;  %v1879_v36 = vpop.f32.mrf.mxu0  ;;  %2730 = vmatprep.subr.mxu1 %v2497_v45 }
 0x321   :  { %v1885_v32 = vadd.f32 %v1808_v42, %v1666_v30  ;;  %v1887_v37 = vadd.f32 %v1879_v36, %v1668_v34  ;;  %2731 = vmatpush3.msra.mxu1 %v2465_v48  ;;  %v1890_v8 = vmax.f32 %v1884_v53, 0.0  ;;  %v1892_v56 = vmax.f32 %v1886_v54, 0.0 }
 0x322   :  { %2732 = vmatprep.subr.mxu1 %v2496_v27 }
 0x323   :  { %v1891_v39 = vmax.f32 %v1885_v32, 0.0  ;;  %v1893_v55 = vmax.f32 %v1887_v37, 0.0  ;;  %2733 = vmatpush3.msra.mxu1 %v2464_v35 }
 0x325   :  { %2227 = vmatprep.mubr.f32.mxu0 %v1891_v39  ;;  %2297 = vmatprep.mubr.f32.mxu1 %v1893_v55 }
 0x326   :  { %2228 = vmatmul.mubr.f32.vlgmr.msra.gmra.mxu0 %v1890_v8  ;;  %2298 = vmatmul.mubr.f32.vlgmr.msra.gmra.mxu1 %v1892_v56 }
 0x3c4   :  { %v2664_v43 = vpop.f32.mrf.mxu1 }
 0x3c6   :  { %v2665_v57 = vpop.f32.mrf.mxu1 }
 0x3c7   :  { %v2666_v58 = vadd.f32 %v2665_v57, %v2664_v43 }
 0x3c9   :  { %v2160_v61 = vadd.f32 %v2666_v58, %v2317_v59 }
 0x3e6   :  { %v2699_v60 = vpop.f32.mrf.mxu0  ;;  %v2734_v1 = vpop.f32.mrf.mxu1 }
 0x3e8   :  { %v2700_v52 = vpop.f32.mrf.mxu0  ;;  %v2735_v28 = vpop.f32.mrf.mxu1 }
 0x3e9   :  { %v2701_v63 = vadd.f32 %v2700_v52, %v2699_v60  ;;  %v2736_v3 = vadd.f32 %v2735_v28, %v2734_v1 }
 0x3eb   :  { %v2230_v0 = vadd.f32 %v2701_v63, %v2160_v61 }
 0x3ed   :  { %v2300_v4 = vadd.f32 %v2736_v3, %v2230_v0 }
 0x3ef   :  { %2303 = vst [vmem:[%s3851_s7] sm:$0xff] %v2300_v4 }

</bundles_post_ra>
